<compile_context>
chip_gen: v7x
topology: tpu7x:2x2x1
jax: 0.10.0
libtpu: 0.0.40
codegen_flags: <defaults>
</compile_context>

<pallas_src>
import functools
import math

import jax
import jax.numpy as jnp
import numpy as np
from jax.experimental import pallas as pl
from jax.experimental.pallas import tpu as pltpu

_CHUNK = 8      # sublane group — scan chunk size (8 recurrence steps unrolled)
_CONV_PAD = 8   # sublane-aligned history head for the causal depthwise conv (K-1 <= 8)


def _round_up(x, m):
    return ((x + m - 1) // m) * m


# ----------------------------------------------------------------------------- #
# Pallas kernel: one L-tile of one batch element of a full MambaLayer forward.
# ----------------------------------------------------------------------------- #
def _mamba_layer_kernel(
    x_ref,        # (1, LT, Dp)   input tile, f32 (padded channels are zero)
    gamma_ref,    # (1, Dp)       LayerNorm weight (padded cols zero)
    beta_ref,     # (1, Dp)       LayerNorm bias   (padded cols zero)
    w_in_ref,     # (Dp, 2*dip)   in_proj, bf16
    conv_w_ref,   # (K, dip)      depthwise conv weight (tap, channel), f32
    conv_b_ref,   # (1, dip)      depthwise conv bias, f32
    w_xf_ref,     # (dip, dip+2N) fused [x_proj_dt @ dt_proj | x_proj_B | x_proj_C], bf16
    b_dt_ref,     # (1, dip)      dt_proj bias, f32
    a_neg_ref,    # (N, dip)      A = -exp(A_log), transposed, f32 (padded cols zero)
    d_vec_ref,    # (1, dip)      D skip parameter, f32
    w_out_ref,    # (dip, Dp)     out_proj, bf16
    out_ref,      # (1, LT, Dp)   output tile, f32
    # scratch (persists across grid steps -> carries state across L-tiles):
    du_s,         # (LT, dip)       f32  delta*xc before the scan; reused as y after
    dbc_s,        # (LT, dip+2N)    f32  packed [delta | B | C] (single lane-dense slab)
    xc_s,         # (LT, dip)       bf16 conv+SiLU activations (post-scan skip / gate path)
    z_s,          # (LT, dip)       bf16 gate
    tail_s,       # (_CONV_PAD,dip) f32  last 8 xp rows of previous tile (conv history)
    state_s,      # (N, dip)        f32  scan state carried across L-tiles
    *,
    LT, D, Dp, dip, N, K, CH, exp_dtype,
):
    lt = pl.program_id(1)

    # ---- reset the carried state at the start of every sequence (first L-tile) ----
    @pl.when(lt == 0)
    def _():
        state_s[...] = jnp.zeros_like(state_s)
        tail_s[...] = jnp.zeros_like(tail_s)

    x_in = x_ref[0]                                           # (LT, Dp)

    # ---- LayerNorm over the REAL D channels (padded channels of x are zero) ----
    # mu is exact (zeros add nothing); variance corrected for the (Dp-D) zero columns.
    inv_d = 1.0 / D
    mu = jnp.sum(x_in, axis=-1, keepdims=True) * inv_d
    diff = x_in - mu
    var = (jnp.sum(diff * diff, axis=-1, keepdims=True) - (Dp - D) * mu * mu) * inv_d
    xn = diff * jax.lax.rsqrt(var + 1e-5) * gamma_ref[...] + beta_ref[...]

    # ---- in_proj: (LT, Dp) @ (Dp, 2*dip), bf16 MXU / f32 accumulate ----
    xz = jnp.dot(xn.astype(jnp.bfloat16), w_in_ref[...],
                 preferred_element_type=jnp.float32)
    xp = xz[:, :dip]                                          # (LT, dip)
    z_s[...] = xz[:, dip:].astype(jnp.bfloat16)               # gate, consumed post-scan

    # ---- causal depthwise conv1d (kernel K, padding K-1) + SiLU ----
    # Shifted static slices of [prev-tile tail | current xp]; no iota/where masks.
    xp_full = jnp.concatenate([tail_s[...], xp], axis=0)      # (_CONV_PAD + LT, dip)
    cw = conv_w_ref[...]
    acc = jnp.broadcast_to(conv_b_ref[...], (LT, dip))
    for k in range(K):
        s = K - 1 - k                                         # distance into the past
        if s == 0:
            acc = acc + xp * cw[k:k + 1, :]
        else:
            acc = acc + xp_full[_CONV_PAD - s:_CONV_PAD - s + LT, :] * cw[k:k + 1, :]
    tail_s[...] = xp[LT - _CONV_PAD:, :]                      # history for next tile
    xc = jax.nn.silu(acc)                                     # (LT, dip) f32
    xc_s[...] = xc.astype(jnp.bfloat16)

    # ---- fused x_proj (+ folded dt_proj): (LT, dip) @ (dip, dip+2N) ----
    x_dbl = jnp.dot(xc.astype(jnp.bfloat16), w_xf_ref[...],
                    preferred_element_type=jnp.float32)       # (LT, dip+2N)
    delta = jax.nn.softplus(x_dbl[:, :dip] + b_dt_ref[...])   # (LT, dip) f32
    du_s[...] = delta * xc                                    # hoisted out of the scan
    # single lane-dense store of [delta | B | C]
    dbc_s[...] = jnp.concatenate([delta, x_dbl[:, dip:]], axis=1)

    # ---- selective scan: chunks of CH timesteps, inner CH steps unrolled ----
    n_chunks = LT // CH

    def chunk_body(c, state):                                 # state: (N, dip) f32
        base = pl.multiple_of(c * CH, CH)
        a_t = a_neg_ref[...]                                  # (N, dip)
        dbc = dbc_s[pl.ds(base, CH), :]                       # (CH, dip+2N)
        du_ch = du_s[pl.ds(base, CH), :]                      # (CH, dip)
        d_ch = dbc[:, :dip]                                   # (CH, dip)
        bc_t = jnp.transpose(dbc[:, dip:])                    # (2N, CH) one XLU xpose/chunk
        # bulk EUP exp for the whole chunk — off the serial state chain
        dA_ch = jnp.exp((d_ch[:, None, :] * a_t[None, :, :]).astype(exp_dtype))
        ys = []
        for j in range(CH):                                   # fully unrolled
            b_col = bc_t[:N, j:j + 1]                         # (N, 1)
            c_col = bc_t[N:, j:j + 1]                         # (N, 1)
            dBu = du_ch[j:j + 1, :] * b_col                   # (N, dip)  off-chain VPU
            state = dA_ch[j].astype(jnp.float32) * state + dBu  # serial chain: 2 VPU ops
            ys.append(jnp.sum(c_col * state, axis=0, keepdims=True))  # (1, dip) XLU
        du_s[pl.ds(base, CH), :] = jnp.concatenate(ys, axis=0)  # reuse du_s as y buffer
        return state

    state = jax.lax.fori_loop(0, n_chunks, chunk_body, state_s[...])
    state_s[...] = state                                      # carry to next L-tile

    # ---- skip (D), gating with SiLU(z), out_proj, residual ----
    y = du_s[...] + xc_s[...].astype(jnp.float32) * d_vec_ref[...]
    y = y * jax.nn.silu(z_s[...].astype(jnp.float32))
    out = jnp.dot(y.astype(jnp.bfloat16), w_out_ref[...],
                  preferred_element_type=jnp.float32)         # (LT, Dp)
    out_ref[0] = x_ref[0] + out                               # re-read residual (cheap)


# ----------------------------------------------------------------------------- #
# Wrapper: padding, weight fusion, specs, pallas_call.
# ----------------------------------------------------------------------------- #
def mamba_layer_pallas(x, p, lt_target=512):
    """One MambaLayer forward: out = x + SSM(LayerNorm(x)).  x: (B, L, D) float32."""
    Bt, L, D = x.shape
    di = p["w_in"].shape[1] // 2
    N = p["a_neg_T"].shape[0]
    R = p["w_dt"].shape[0]
    K = p["conv_w"].shape[0]

    CH = _CHUNK
    Dp = _round_up(D, 128)            # lane-dense d_model
    dip = _round_up(di, 128)          # lane-dense d_inner
    LT = min(_round_up(L, CH), _round_up(max(lt_target, CH), CH))
    LP = _round_up(L, LT)
    n_lt = LP // LT

    # device-dependent knobs: bf16 EUP only exists on v6e/v7x; v7x VMEM is 64 MiB.
    kind = jax.devices()[0].device_kind.lower()
    exp_dtype = jnp.bfloat16 if ("v6" in kind or "v7" in kind) else jnp.float32
    vmem_cap = (56 << 20) if "v7" in kind else (100 << 20)

    # ---- zero-pad input and parameters into lane-dense shapes ----
    x_p = jnp.pad(x, ((0, 0), (0, LP - L), (0, Dp - D)))

    def padw(w, shape):
        return jnp.zeros(shape, w.dtype).at[: w.shape[0], : w.shape[1]].set(w)

    # in_proj: keep the [x | z] halves at offsets [0:dip] / [dip:2*dip]
    w_in = p["w_in"]
    w_in_p = jnp.zeros((Dp, 2 * dip), jnp.float32)
    w_in_p = w_in_p.at[:D, :di].set(w_in[:, :di])
    w_in_p = w_in_p.at[:D, dip:dip + di].set(w_in[:, di:])

    # fold dt_proj into x_proj, keep layout [delta-part | B | C] with delta at [0:dip]
    w_xf = jnp.concatenate([p["w_x"][:, :R] @ p["w_dt"], p["w_x"][:, R:]], axis=1)
    w_xf_p = jnp.zeros((dip, dip + 2 * N), jnp.float32)
    w_xf_p = w_xf_p.at[:di, :di].set(w_xf[:, :di])
    w_xf_p = w_xf_p.at[:di, dip:].set(w_xf[:, di:])

    weights = [
        padw(p["gamma"], (1, Dp)), padw(p["beta"], (1, Dp)),
        w_in_p.astype(jnp.bfloat16),
        padw(p["conv_w"], (K, dip)), padw(p["conv_b"], (1, dip)),
        w_xf_p.astype(jnp.bfloat16),
        padw(p["b_dt"], (1, dip)), padw(p["a_neg_T"], (N, dip)),
        padw(p["d_vec"], (1, dip)),
        padw(p["w_out"], (dip, Dp)).astype(jnp.bfloat16),
    ]

    kernel = functools.partial(_mamba_layer_kernel, LT=LT, D=D, Dp=Dp, dip=dip,
                               N=N, K=K, CH=CH, exp_dtype=exp_dtype)

    # x / out are pipelined per L-tile; weights are single-buffered (constant index map).
    in_specs = [pl.BlockSpec((1, LT, Dp), lambda b, l: (b, l, 0))]
    for w in weights:
        in_specs.append(
            pl.BlockSpec(w.shape, lambda b, l, n=w.ndim: (0,) * n,
                         pipeline_mode=pl.Buffered(1)))

    scratch_shapes = [
        pltpu.VMEM((LT, dip), jnp.float32),              # du (then y)
        pltpu.VMEM((LT, dip + 2 * N), jnp.float32),      # packed [delta | B | C]
        pltpu.VMEM((LT, dip), jnp.bfloat16),             # xc
        pltpu.VMEM((LT, dip), jnp.bfloat16),             # z
        pltpu.VMEM((_CONV_PAD, dip), jnp.float32),       # conv history tail
        pltpu.VMEM((N, dip), jnp.float32),               # scan state carry
    ]

    # ---- explicit scoped-VMEM limit sized from the real footprint ----
    scratch_bytes = (LT * dip * 4 + LT * (dip + 2 * N) * 4 + 2 * LT * dip * 2
                     + _CONV_PAD * dip * 4 + N * dip * 4)
    io_bytes = 2 * 2 * LT * Dp * 4                            # x + out, double-buffered
    weight_bytes = sum(int(np.prod(w.shape)) * w.dtype.itemsize for w in weights)
    temp_bytes = (LT * 2 * dip * 4 + LT * (dip + 2 * N) * 4
                  + CH * N * dip * 4 + 4 * LT * dip * 4)      # GEMM outputs, dA chunk, etc.
    vmem_limit = int(min(vmem_cap,
                         max(32 << 20,
                             2 * (scratch_bytes + io_bytes + weight_bytes + temp_bytes))))

    gemm_flops = 2 * LP * (Dp * 2 * dip + dip * (dip + 2 * N) + dip * Dp)
    cost = pl.CostEstimate(
        flops=int(Bt * (gemm_flops + LP * N * dip * 6)),
        transcendentals=int(Bt * LP * (N * dip + 4 * dip)),
        bytes_accessed=int(2 * Bt * LP * Dp * 4 + weight_bytes),
    )

    grid_spec = pltpu.PrefetchScalarGridSpec(
        num_scalar_prefetch=0,
        grid=(Bt, n_lt),
        in_specs=in_specs,
        out_specs=pl.BlockSpec((1, LT, Dp), lambda b, l: (b, l, 0)),
        scratch_shapes=scratch_shapes,
    )

    out = pl.pallas_call(
        kernel,
        out_shape=jax.ShapeDtypeStruct((Bt, LP, Dp), jnp.float32),
        grid_spec=grid_spec,
        compiler_params=pltpu.CompilerParams(
            # batch is independent -> sharded across v7x's 2 TensorCores;
            # the L-tile axis carries scan/conv state -> must stay sequential.
            dimension_semantics=("parallel", "arbitrary"),
            vmem_limit_bytes=vmem_limit,
        ),
        cost_estimate=cost,
    )(x_p, *weights)

    return out[:, :L, :D]


# ----------------------------------------------------------------------------- #
# Pure-JAX f32 reference (also used for the tiny router pass — an M=num_blocks
# Pallas launch would be pure per-call overhead).
# ----------------------------------------------------------------------------- #
def mamba_layer_ref(x, p):
    di = p["w_in"].shape[1] // 2
    N = p["a_neg_T"].shape[0]
    R = p["w_dt"].shape[0]
    K = p["conv_w"].shape[0]
    Bt, L, D = x.shape

    mu = jnp.mean(x, -1, keepdims=True)
    var = jnp.mean((x - mu) ** 2, -1, keepdims=True)
    xn = (x - mu) * jax.lax.rsqrt(var + 1e-5) * p["gamma"][0] + p["beta"][0]
    xz = xn @ p["w_in"]
    xp, z = xz[..., :di], xz[..., di:]
    xpad = jnp.pad(xp, ((0, 0), (K - 1, 0), (0, 0)))
    conv = sum(xpad[:, k:k + L, :] * p["conv_w"][k] for k in range(K)) + p["conv_b"][0]
    xc = jax.nn.silu(conv)
    x_dbl = xc @ p["w_x"]
    dl, Bm, Cm = x_dbl[..., :R], x_dbl[..., R:R + N], x_dbl[..., R + N:]
    delta = jax.nn.softplus(dl @ p["w_dt"] + p["b_dt"][0])
    A = jnp.transpose(p["a_neg_T"])                          # (di, N)
    dA = jnp.exp(delta[..., None] * A)                       # (B, L, di, N)
    dBu = delta[..., None] * Bm[:, :, None, :] * xc[..., None]

    def step(state, inp):
        dA_l, dBu_l, c_l = inp
        state = dA_l * state + dBu_l
        y = jnp.einsum("bdn,bn->bd", state, c_l)
        return state, y

    state0 = jnp.zeros((Bt, di, N), jnp.float32)
    _, ys = jax.lax.scan(
        step, state0,
        (jnp.moveaxis(dA, 1, 0), jnp.moveaxis(dBu, 1, 0), jnp.moveaxis(Cm, 1, 0)),
    )
    y = jnp.moveaxis(ys, 0, 1)
    y = y + xc * p["d_vec"][0]
    y = y * jax.nn.silu(z)
    return x + y @ p["w_out"]


# ----------------------------------------------------------------------------- #
# CardioformerMambaLayer forward (glue in plain JAX).
# ----------------------------------------------------------------------------- #
def cardioformer_forward(xs, intra_params, inter_params,
                         mamba_fn=mamba_layer_pallas, router_fn=None):
    x_intra = [mamba_fn(x_in, p) for x_in, p in zip(xs, intra_params)]
    if inter_params is not None:
        routers = jnp.concatenate([x[:, -1:, :] for x in x_intra], axis=1)  # (B, nb, D)
        rfn = router_fn if router_fn is not None else mamba_layer_ref       # tiny L -> JAX
        x_inter = rfn(routers, inter_params)
        x_out = [
            jnp.concatenate([x[:, :-1, :], x_inter[:, i:i + 1, :]], axis=1)
            for i, x in enumerate(x_intra)
        ]
    else:
        x_out = x_intra
    return x_out
    # NOTE: dropout is defined in the torch module but never applied in forward.


# ----------------------------------------------------------------------------- #
# Deterministic parameter init (matches shapes / init logic of the torch module).
# ----------------------------------------------------------------------------- #
def init_mamba_params(key, d_model, d_state=16, d_conv=4, expand=2,
                      dt_min=0.001, dt_max=0.1):
    di = expand * d_model
    R = math.ceil(d_model / 16)
    ks = jax.random.split(key, 7)

    def unif(k, shape, fan_in):
        bound = 1.0 / math.sqrt(fan_in)
        return jax.random.uniform(k, shape, jnp.float32, -bound, bound)

    w_in = unif(ks[0], (d_model, 2 * di), d_model)
    conv_w = unif(ks[1], (d_conv, di), d_conv)
    conv_b = unif(ks[2], (1, di), d_conv)
    w_x = unif(ks[3], (di, R + 2 * d_state), di)
    w_dt = unif(ks[4], (R, di), R)
    dt = jnp.exp(
        jax.random.uniform(ks[5], (di,), jnp.float32)
        * (math.log(dt_max) - math.log(dt_min))
        + math.log(dt_min)
    )
    dt = jnp.maximum(dt, dt_min)
    b_dt = (dt + jnp.log(-jnp.expm1(-dt))).reshape(1, di)
    A_log = jnp.log(
        jnp.broadcast_to(jnp.arange(1, d_state + 1, dtype=jnp.float32), (di, d_state))
    )
    a_neg_T = jnp.transpose(-jnp.exp(A_log))                 # (N, di)
    d_vec = jnp.ones((1, di), jnp.float32)
    w_out = unif(ks[6], (di, d_model), di)
    gamma = jnp.ones((1, d_model), jnp.float32)
    beta = jnp.zeros((1, d_model), jnp.float32)
    return dict(
        gamma=gamma, beta=beta, w_in=w_in, conv_w=conv_w, conv_b=conv_b,
        w_x=w_x, w_dt=w_dt, b_dt=b_dt, a_neg_T=a_neg_T, d_vec=d_vec, w_out=w_out,
    )


# ----------------------------------------------------------------------------- #
if __name__ == "__main__":
    key = jax.random.PRNGKey(0)
    # L=37 exercises the multi-chunk scan, L padding (-> 40 / 48) and D / d_inner
    # padding (32 -> 128 / 64 -> 128) paths flagged in the review.
    num_blocks, d_model, B, L = 2, 32, 2, 37

    keys = jax.random.split(key, num_blocks + 2)
    intra_params = [init_mamba_params(keys[i], d_model) for i in range(num_blocks)]
    inter_params = init_mamba_params(keys[num_blocks], d_model)

    xkeys = jax.random.split(keys[num_blocks + 1], num_blocks)
    xs = [jax.random.normal(xkeys[i], (B, L, d_model), jnp.float32)
          for i in range(num_blocks)]

    # Pure-JAX f32 reference
    ref = cardioformer_forward(xs, intra_params, inter_params, mamba_fn=mamba_layer_ref)
    ref = jax.block_until_ready(ref)

    # Pallas path, single L-tile per layer (default lt_target).
    out = cardioformer_forward(xs, intra_params, inter_params,
                               mamba_fn=mamba_layer_pallas)
    out = jax.block_until_ready(out)
    for o, r in zip(out, ref):
        np.testing.assert_allclose(np.asarray(o), np.asarray(r), rtol=5e-2, atol=5e-2)

    # Pallas path with a small L-tile to exercise the cross-tile scan-state and
    # conv-tail carry (3 L-tiles of 16 rows).
    tiled_fn = functools.partial(mamba_layer_pallas, lt_target=16)
    out_t = cardioformer_forward(xs, intra_params, inter_params, mamba_fn=tiled_fn)
    out_t = jax.block_until_ready(out_t)
    for o, r in zip(out_t, ref):
        np.testing.assert_allclose(np.asarray(o), np.asarray(r), rtol=5e-2, atol=5e-2)

    print("KERNEL_OK")
</pallas_src>

<mosaic_0001>
module attributes {stable_mosaic.version = 11 : i64} {
  func.func @_mamba_layer_kernel(%arg0: i32, %arg1: i32, %arg2: memref<1x40x128xf32, #tpu.memory_space<vmem>>, %arg3: memref<1x128xf32, #tpu.memory_space<vmem>>, %arg4: memref<1x128xf32, #tpu.memory_space<vmem>>, %arg5: memref<128x256xbf16, #tpu.memory_space<vmem>>, %arg6: memref<4x128xf32, #tpu.memory_space<vmem>>, %arg7: memref<1x128xf32, #tpu.memory_space<vmem>>, %arg8: memref<128x160xbf16, #tpu.memory_space<vmem>>, %arg9: memref<1x128xf32, #tpu.memory_space<vmem>>, %arg10: memref<16x128xf32, #tpu.memory_space<vmem>>, %arg11: memref<1x128xf32, #tpu.memory_space<vmem>>, %arg12: memref<128x128xbf16, #tpu.memory_space<vmem>>, %arg13: memref<1x40x128xf32, #tpu.memory_space<vmem>>, %arg14: memref<40x128xf32, #tpu.memory_space<vmem>>, %arg15: memref<40x160xf32, #tpu.memory_space<vmem>>, %arg16: memref<40x128xbf16, #tpu.memory_space<vmem>>, %arg17: memref<40x128xbf16, #tpu.memory_space<vmem>>, %arg18: memref<8x128xf32, #tpu.memory_space<vmem>>, %arg19: memref<16x128xf32, #tpu.memory_space<vmem>>) attributes {dimension_semantics = [#tpu.dimension_semantics<parallel>, #tpu.dimension_semantics<arbitrary>], iteration_bounds = array<i64: 2, 1>, scalar_prefetch = 0 : i64, scratch_operands = 6 : i64, tpu.core_type = #tpu.core_type<tc>, window_params = [{transform_indices = @transform_0, window_bounds = array<i64: 1, 40, 128>}, {pipeline_mode = #tpu.pipeline_mode<synchronous>, transform_indices = @transform_1, window_bounds = array<i64: 1, 128>}, {pipeline_mode = #tpu.pipeline_mode<synchronous>, transform_indices = @transform_2, window_bounds = array<i64: 1, 128>}, {pipeline_mode = #tpu.pipeline_mode<synchronous>, transform_indices = @transform_3, window_bounds = array<i64: 128, 256>}, {pipeline_mode = #tpu.pipeline_mode<synchronous>, transform_indices = @transform_4, window_bounds = array<i64: 4, 128>}, {pipeline_mode = #tpu.pipeline_mode<synchronous>, transform_indices = @transform_5, window_bounds = array<i64: 1, 128>}, {pipeline_mode = #tpu.pipeline_mode<synchronous>, transform_indices = @transform_6, window_bounds = array<i64: 128, 160>}, {pipeline_mode = #tpu.pipeline_mode<synchronous>, transform_indices = @transform_7, window_bounds = array<i64: 1, 128>}, {pipeline_mode = #tpu.pipeline_mode<synchronous>, transform_indices = @transform_8, window_bounds = array<i64: 16, 128>}, {pipeline_mode = #tpu.pipeline_mode<synchronous>, transform_indices = @transform_9, window_bounds = array<i64: 1, 128>}, {pipeline_mode = #tpu.pipeline_mode<synchronous>, transform_indices = @transform_10, window_bounds = array<i64: 128, 128>}, {transform_indices = @transform_11, window_bounds = array<i64: 1, 40, 128>}]} {
    %c0_i32 = arith.constant 0 : i32
    %0 = arith.cmpi eq, %arg1, %c0_i32 : i32
    %1 = arith.extui %0 : i1 to i32
    %c0_i32_0 = arith.constant 0 : i32
    %2 = arith.cmpi ne, %1, %c0_i32_0 : i32
    scf.if %2 {
      %cst_63 = arith.constant 0.000000e+00 : f32
      %128 = vector.broadcast %cst_63 : f32 to vector<16x128xf32>
      %c0_64 = arith.constant 0 : index
      %c0_65 = arith.constant 0 : index
      %129 = vector.load %arg19[%c0_64, %c0_65] : memref<16x128xf32, #tpu.memory_space<vmem>>, vector<16x128xf32>
      tpu.vector_store %arg19[%c0_64, %c0_65], %128 {strides = array<i32>} : memref<16x128xf32, #tpu.memory_space<vmem>>, vector<16x128xf32>,
      %cst_66 = arith.constant 0.000000e+00 : f32
      %130 = vector.broadcast %cst_66 : f32 to vector<8x128xf32>
      %c0_67 = arith.constant 0 : index
      %c0_68 = arith.constant 0 : index
      %131 = vector.load %arg18[%c0_67, %c0_68] : memref<8x128xf32, #tpu.memory_space<vmem>>, vector<8x128xf32>
      tpu.vector_store %arg18[%c0_67, %c0_68], %130 {strides = array<i32>} : memref<8x128xf32, #tpu.memory_space<vmem>>, vector<8x128xf32>,
    } else {
    }
    %c0 = arith.constant 0 : index
    %c0_1 = arith.constant 0 : index
    %c0_2 = arith.constant 0 : index
    %3 = vector.load %arg2[%c0, %c0_1, %c0_2] : memref<1x40x128xf32, #tpu.memory_space<vmem>>, vector<1x40x128xf32>
    %4 = vector.shape_cast %3 : vector<1x40x128xf32> to vector<40x128xf32>
    %cst = arith.constant dense<0.000000e+00> : vector<40xf32>
    %5 = vector.multi_reduction <add>, %4, %cst [1] : vector<40x128xf32> to vector<40xf32>
    %6 = vector.shape_cast %5 : vector<40xf32> to vector<40x1xf32>
    %cst_3 = arith.constant 3.125000e-02 : f32
    %7 = vector.broadcast %cst_3 : f32 to vector<40x1xf32>
    %8 = arith.mulf %6, %7 : vector<40x1xf32>
    %9 = vector.broadcast %8 : vector<40x1xf32> to vector<40x128xf32>
    %10 = arith.subf %4, %9 : vector<40x128xf32>
    %11 = arith.mulf %10, %10 : vector<40x128xf32>
    %cst_4 = arith.constant dense<0.000000e+00> : vector<40xf32>
    %12 = vector.multi_reduction <add>, %11, %cst_4 [1] : vector<40x128xf32> to vector<40xf32>
    %13 = vector.shape_cast %12 : vector<40xf32> to vector<40x1xf32>
    %cst_5 = arith.constant 9.600000e+01 : f32
    %14 = vector.broadcast %cst_5 : f32 to vector<40x1xf32>
    %15 = arith.mulf %14, %8 : vector<40x1xf32>
    %16 = arith.mulf %15, %8 : vector<40x1xf32>
    %17 = arith.subf %13, %16 : vector<40x1xf32>
    %cst_6 = arith.constant 3.125000e-02 : f32
    %18 = vector.broadcast %cst_6 : f32 to vector<40x1xf32>
    %19 = arith.mulf %17, %18 : vector<40x1xf32>
    %cst_7 = arith.constant 9.99999974E-6 : f32
    %20 = vector.broadcast %cst_7 : f32 to vector<40x1xf32>
    %21 = arith.addf %19, %20 : vector<40x1xf32>
    %22 = math.rsqrt %21 : vector<40x1xf32>
    %23 = vector.broadcast %22 : vector<40x1xf32> to vector<40x128xf32>
    %24 = arith.mulf %10, %23 : vector<40x128xf32>
    %c0_8 = arith.constant 0 : index
    %c0_9 = arith.constant 0 : index
    %25 = vector.load %arg3[%c0_8, %c0_9] : memref<1x128xf32, #tpu.memory_space<vmem>>, vector<1x128xf32>
    %26 = vector.broadcast %25 : vector<1x128xf32> to vector<40x128xf32>
    %27 = arith.mulf %24, %26 : vector<40x128xf32>
    %c0_10 = arith.constant 0 : index
    %c0_11 = arith.constant 0 : index
    %28 = vector.load %arg4[%c0_10, %c0_11] : memref<1x128xf32, #tpu.memory_space<vmem>>, vector<1x128xf32>
    %29 = vector.broadcast %28 : vector<1x128xf32> to vector<40x128xf32>
    %30 = arith.addf %27, %29 : vector<40x128xf32>
    %31 = arith.truncf %30 : vector<40x128xf32> to vector<40x128xbf16>
    %c0_12 = arith.constant 0 : index
    %c0_13 = arith.constant 0 : index
    %32 = vector.load %arg5[%c0_12, %c0_13] : memref<128x256xbf16, #tpu.memory_space<vmem>>, vector<128x256xbf16>
    %cst_14 = arith.constant dense<0.000000e+00> : vector<40x256xf32>
    %33 = tpu.matmul %31, %32, %cst_14 {dimension_numbers = #tpu.dot_dimension_numbers<[1], [0], [0], [1], [0, 0, 1, 1], [], []>} : vector<40x128xbf16>, vector<128x256xbf16>, vector<40x256xf32> -> vector<40x256xf32>
    %34 = vector.extract_strided_slice %33 {offsets = [0, 0], sizes = [40, 128], strides = [1, 1]} : vector<40x256xf32> to vector<40x128xf32>
    %35 = vector.extract_strided_slice %33 {offsets = [0, 128], sizes = [40, 128], strides = [1, 1]} : vector<40x256xf32> to vector<40x128xf32>
    %36 = arith.truncf %35 : vector<40x128xf32> to vector<40x128xbf16>
    %c0_15 = arith.constant 0 : index
    %c0_16 = arith.constant 0 : index
    %37 = vector.load %arg17[%c0_15, %c0_16] : memref<40x128xbf16, #tpu.memory_space<vmem>>, vector<40x128xbf16>
    tpu.vector_store %arg17[%c0_15, %c0_16], %36 {strides = array<i32>} : memref<40x128xbf16, #tpu.memory_space<vmem>>, vector<40x128xbf16>,
    %c0_17 = arith.constant 0 : index
    %c0_18 = arith.constant 0 : index
    %38 = vector.load %arg18[%c0_17, %c0_18] : memref<8x128xf32, #tpu.memory_space<vmem>>, vector<8x128xf32>
    %39 = tpu.concatenate %38, %34 in 0 : vector<8x128xf32>, vector<40x128xf32> -> vector<48x128xf32>
    %c0_19 = arith.constant 0 : index
    %c0_20 = arith.constant 0 : index
    %40 = vector.load %arg6[%c0_19, %c0_20] : memref<4x128xf32, #tpu.memory_space<vmem>>, vector<4x128xf32>
    %c0_21 = arith.constant 0 : index
    %c0_22 = arith.constant 0 : index
    %41 = vector.load %arg7[%c0_21, %c0_22] : memref<1x128xf32, #tpu.memory_space<vmem>>, vector<1x128xf32>
    %42 = vector.shape_cast %41 : vector<1x128xf32> to vector<1x128xf32>
    %43 = vector.broadcast %42 : vector<1x128xf32> to vector<40x128xf32>
    %44 = vector.extract_strided_slice %39 {offsets = [5, 0], sizes = [40, 128], strides = [1, 1]} : vector<48x128xf32> to vector<40x128xf32>
    %45 = vector.extract_strided_slice %40 {offsets = [0, 0], sizes = [1, 128], strides = [1, 1]} : vector<4x128xf32> to vector<1x128xf32>
    %46 = vector.broadcast %45 : vector<1x128xf32> to vector<40x128xf32>
    %47 = arith.mulf %44, %46 : vector<40x128xf32>
    %48 = arith.addf %43, %47 : vector<40x128xf32>
    %49 = vector.extract_strided_slice %39 {offsets = [6, 0], sizes = [40, 128], strides = [1, 1]} : vector<48x128xf32> to vector<40x128xf32>
    %50 = vector.extract_strided_slice %40 {offsets = [1, 0], sizes = [1, 128], strides = [1, 1]} : vector<4x128xf32> to vector<1x128xf32>
    %51 = vector.broadcast %50 : vector<1x128xf32> to vector<40x128xf32>
    %52 = arith.mulf %49, %51 : vector<40x128xf32>
    %53 = arith.addf %48, %52 : vector<40x128xf32>
    %54 = vector.extract_strided_slice %39 {offsets = [7, 0], sizes = [40, 128], strides = [1, 1]} : vector<48x128xf32> to vector<40x128xf32>
    %55 = vector.extract_strided_slice %40 {offsets = [2, 0], sizes = [1, 128], strides = [1, 1]} : vector<4x128xf32> to vector<1x128xf32>
    %56 = vector.broadcast %55 : vector<1x128xf32> to vector<40x128xf32>
    %57 = arith.mulf %54, %56 : vector<40x128xf32>
    %58 = arith.addf %53, %57 : vector<40x128xf32>
    %59 = vector.extract_strided_slice %40 {offsets = [3, 0], sizes = [1, 128], strides = [1, 1]} : vector<4x128xf32> to vector<1x128xf32>
    %60 = vector.broadcast %59 : vector<1x128xf32> to vector<40x128xf32>
    %61 = arith.mulf %34, %60 : vector<40x128xf32>
    %62 = arith.addf %58, %61 : vector<40x128xf32>
    %63 = vector.extract_strided_slice %34 {offsets = [32, 0], sizes = [8, 128], strides = [1, 1]} : vector<40x128xf32> to vector<8x128xf32>
    %c0_23 = arith.constant 0 : index
    %c0_24 = arith.constant 0 : index
    %64 = vector.load %arg18[%c0_23, %c0_24] : memref<8x128xf32, #tpu.memory_space<vmem>>, vector<8x128xf32>
    tpu.vector_store %arg18[%c0_23, %c0_24], %63 {strides = array<i32>} : memref<8x128xf32, #tpu.memory_space<vmem>>, vector<8x128xf32>,
    %65 = arith.negf %62 : vector<40x128xf32>
    %66 = math.exp %65 : vector<40x128xf32>
    %cst_25 = arith.constant 1.000000e+00 : f32
    %67 = vector.broadcast %cst_25 : f32 to vector<40x128xf32>
    %68 = arith.addf %67, %66 : vector<40x128xf32>
    %69 = arith.divf %67, %68 : vector<40x128xf32>
    %70 = arith.mulf %62, %69 : vector<40x128xf32>
    %71 = arith.truncf %70 : vector<40x128xf32> to vector<40x128xbf16>
    %c0_26 = arith.constant 0 : index
    %c0_27 = arith.constant 0 : index
    %72 = vector.load %arg16[%c0_26, %c0_27] : memref<40x128xbf16, #tpu.memory_space<vmem>>, vector<40x128xbf16>
    tpu.vector_store %arg16[%c0_26, %c0_27], %71 {strides = array<i32>} : memref<40x128xbf16, #tpu.memory_space<vmem>>, vector<40x128xbf16>,
    %73 = arith.truncf %70 : vector<40x128xf32> to vector<40x128xbf16>
    %c0_28 = arith.constant 0 : index
    %c0_29 = arith.constant 0 : index
    %74 = vector.load %arg8[%c0_28, %c0_29] : memref<128x160xbf16, #tpu.memory_space<vmem>>, vector<128x160xbf16>
    %cst_30 = arith.constant dense<0.000000e+00> : vector<40x160xf32>
    %75 = tpu.matmul %73, %74, %cst_30 {dimension_numbers = #tpu.dot_dimension_numbers<[1], [0], [0], [1], [0, 0, 1, 1], [], []>} : vector<40x128xbf16>, vector<128x160xbf16>, vector<40x160xf32> -> vector<40x160xf32>
    %76 = vector.extract_strided_slice %75 {offsets = [0, 0], sizes = [40, 128], strides = [1, 1]} : vector<40x160xf32> to vector<40x128xf32>
    %c0_31 = arith.constant 0 : index
    %c0_32 = arith.constant 0 : index
    %77 = vector.load %arg9[%c0_31, %c0_32] : memref<1x128xf32, #tpu.memory_space<vmem>>, vector<1x128xf32>
    %78 = vector.broadcast %77 : vector<1x128xf32> to vector<40x128xf32>
    %79 = arith.addf %76, %78 : vector<40x128xf32>
    %cst_33 = arith.constant 0.000000e+00 : f32
    %80 = vector.broadcast %cst_33 : f32 to vector<40x128xf32>
    %81 = arith.maximumf %79, %80 : vector<40x128xf32>
    %82 = vector.broadcast %cst_33 : f32 to vector<40x128xf32>
    %83 = arith.subf %79, %82 : vector<40x128xf32>
    %84 = arith.cmpf one, %83, %83 : vector<40x128xf32>
    %85 = vector.broadcast %cst_33 : f32 to vector<40x128xf32>
    %86 = arith.addf %79, %85 : vector<40x128xf32>
    %87 = math.absf %83 : vector<40x128xf32>
    %cst_34 = arith.constant 0.000000e+00 : f32
    %88 = vector.broadcast %cst_34 : f32 to vector<40x128xf32>
    %89 = arith.subf %88, %87 : vector<40x128xf32>
    %90 = math.exp %89 : vector<40x128xf32>
    %91 = math.log1p %90 : vector<40x128xf32>
    %92 = arith.addf %81, %91 : vector<40x128xf32>
    %93 = arith.select %84, %86, %92 : vector<40x128xi1>, vector<40x128xf32>
    %94 = arith.mulf %93, %70 : vector<40x128xf32>
    %c0_35 = arith.constant 0 : index
    %c0_36 = arith.constant 0 : index
    %95 = vector.load %arg14[%c0_35, %c0_36] : memref<40x128xf32, #tpu.memory_space<vmem>>, vector<40x128xf32>
    tpu.vector_store %arg14[%c0_35, %c0_36], %94 {strides = array<i32>} : memref<40x128xf32, #tpu.memory_space<vmem>>, vector<40x128xf32>,
    %96 = vector.extract_strided_slice %75 {offsets = [0, 128], sizes = [40, 32], strides = [1, 1]} : vector<40x160xf32> to vector<40x32xf32>
    %97 = tpu.concatenate %93, %96 in 1 : vector<40x128xf32>, vector<40x32xf32> -> vector<40x160xf32>
    %c0_37 = arith.constant 0 : index
    %c0_38 = arith.constant 0 : index
    %98 = vector.load %arg15[%c0_37, %c0_38] : memref<40x160xf32, #tpu.memory_space<vmem>>, vector<40x160xf32>
    tpu.vector_store %arg15[%c0_37, %c0_38], %97 {strides = array<i32>} : memref<40x160xf32, #tpu.memory_space<vmem>>, vector<40x160xf32>,
    %c0_39 = arith.constant 0 : index
    %c0_40 = arith.constant 0 : index
    %99 = vector.load %arg19[%c0_39, %c0_40] : memref<16x128xf32, #tpu.memory_space<vmem>>, vector<16x128xf32>
    %c0_i32_41 = arith.constant 0 : i32
    %c5_i32 = arith.constant 5 : i32
    %100 = arith.addi %c0_i32_41, %c5_i32 : i32
    %c1_i32 = arith.constant 1 : i32
    %101 = scf.for %arg20 = %c0_i32_41 to %100 step %c1_i32 iter_args(%arg21 = %99) -> (vector<16x128xf32>)  : i32 {
      %c8_i32 = arith.constant 8 : i32
      %128 = arith.muli %arg20, %c8_i32 : i32
      %129 = tpu.assume_multiple %128, 8 : i32
      %c0_63 = arith.constant 0 : index
      %c0_64 = arith.constant 0 : index
      %130 = vector.load %arg10[%c0_63, %c0_64] : memref<16x128xf32, #tpu.memory_space<vmem>>, vector<16x128xf32>
      %131 = arith.index_cast %129 : i32 to index
      %c0_65 = arith.constant 0 : index
      %132 = vector.load %arg15[%131, %c0_65] : memref<40x160xf32, #tpu.memory_space<vmem>>, vector<8x160xf32>
      %133 = arith.index_cast %129 : i32 to index
      %c0_66 = arith.constant 0 : index
      %134 = vector.load %arg14[%133, %c0_66] : memref<40x128xf32, #tpu.memory_space<vmem>>, vector<8x128xf32>
      %135 = vector.extract_strided_slice %132 {offsets = [0, 0], sizes = [8, 128], strides = [1, 1]} : vector<8x160xf32> to vector<8x128xf32>
      %136 = vector.extract_strided_slice %132 {offsets = [0, 128], sizes = [8, 32], strides = [1, 1]} : vector<8x160xf32> to vector<8x32xf32>
      %137 = tpu.transpose %136, [1, 0] : vector<8x32xf32> -> vector<32x8xf32>
      %138 = vector.shape_cast %135 : vector<8x128xf32> to vector<8x1x128xf32>
      %139 = vector.shape_cast %130 : vector<16x128xf32> to vector<1x16x128xf32>
      %140 = vector.broadcast %138 : vector<8x1x128xf32> to vector<8x16x128xf32>
      %141 = vector.broadcast %139 : vector<1x16x128xf32> to vector<8x16x128xf32>
      %142 = arith.mulf %140, %141 : vector<8x16x128xf32>
      %143 = math.exp %142 : vector<8x16x128xf32>
      %144 = vector.extract_strided_slice %137 {offsets = [0, 0], sizes = [16, 1], strides = [1, 1]} : vector<32x8xf32> to vector<16x1xf32>
      %145 = vector.extract_strided_slice %137 {offsets = [16, 0], sizes = [16, 1], strides = [1, 1]} : vector<32x8xf32> to vector<16x1xf32>
      %146 = vector.extract_strided_slice %134 {offsets = [0, 0], sizes = [1, 128], strides = [1, 1]} : vector<8x128xf32> to vector<1x128xf32>
      %147 = vector.broadcast %146 : vector<1x128xf32> to vector<16x128xf32>
      %148 = vector.broadcast %144 : vector<16x1xf32> to vector<16x128xf32>
      %149 = arith.mulf %147, %148 : vector<16x128xf32>
      %150 = vector.extract_strided_slice %143 {offsets = [0, 0, 0], sizes = [1, 16, 128], strides = [1, 1, 1]} : vector<8x16x128xf32> to vector<1x16x128xf32>
      %151 = vector.shape_cast %150 : vector<1x16x128xf32> to vector<16x128xf32>
      %152 = arith.mulf %151, %arg21 : vector<16x128xf32>
      %153 = arith.addf %152, %149 : vector<16x128xf32>
      %154 = vector.broadcast %145 : vector<16x1xf32> to vector<16x128xf32>
      %155 = arith.mulf %154, %153 : vector<16x128xf32>
      %cst_67 = arith.constant dense<0.000000e+00> : vector<128xf32>
      %156 = vector.multi_reduction <add>, %155, %cst_67 [0] : vector<16x128xf32> to vector<128xf32>
      %157 = vector.shape_cast %156 : vector<128xf32> to vector<1x128xf32>
      %158 = vector.extract_strided_slice %137 {offsets = [0, 1], sizes = [16, 1], strides = [1, 1]} : vector<32x8xf32> to vector<16x1xf32>
      %159 = vector.extract_strided_slice %137 {offsets = [16, 1], sizes = [16, 1], strides = [1, 1]} : vector<32x8xf32> to vector<16x1xf32>
      %160 = vector.extract_strided_slice %134 {offsets = [1, 0], sizes = [1, 128], strides = [1, 1]} : vector<8x128xf32> to vector<1x128xf32>
      %161 = vector.broadcast %160 : vector<1x128xf32> to vector<16x128xf32>
      %162 = vector.broadcast %158 : vector<16x1xf32> to vector<16x128xf32>
      %163 = arith.mulf %161, %162 : vector<16x128xf32>
      %164 = vector.extract_strided_slice %143 {offsets = [1, 0, 0], sizes = [1, 16, 128], strides = [1, 1, 1]} : vector<8x16x128xf32> to vector<1x16x128xf32>
      %165 = vector.shape_cast %164 : vector<1x16x128xf32> to vector<16x128xf32>
      %166 = arith.mulf %165, %153 : vector<16x128xf32>
      %167 = arith.addf %166, %163 : vector<16x128xf32>
      %168 = vector.broadcast %159 : vector<16x1xf32> to vector<16x128xf32>
      %169 = arith.mulf %168, %167 : vector<16x128xf32>
      %cst_68 = arith.constant dense<0.000000e+00> : vector<128xf32>
      %170 = vector.multi_reduction <add>, %169, %cst_68 [0] : vector<16x128xf32> to vector<128xf32>
      %171 = vector.shape_cast %170 : vector<128xf32> to vector<1x128xf32>
      %172 = vector.extract_strided_slice %137 {offsets = [0, 2], sizes = [16, 1], strides = [1, 1]} : vector<32x8xf32> to vector<16x1xf32>
      %173 = vector.extract_strided_slice %137 {offsets = [16, 2], sizes = [16, 1], strides = [1, 1]} : vector<32x8xf32> to vector<16x1xf32>
      %174 = vector.extract_strided_slice %134 {offsets = [2, 0], sizes = [1, 128], strides = [1, 1]} : vector<8x128xf32> to vector<1x128xf32>
      %175 = vector.broadcast %174 : vector<1x128xf32> to vector<16x128xf32>
      %176 = vector.broadcast %172 : vector<16x1xf32> to vector<16x128xf32>
      %177 = arith.mulf %175, %176 : vector<16x128xf32>
      %178 = vector.extract_strided_slice %143 {offsets = [2, 0, 0], sizes = [1, 16, 128], strides = [1, 1, 1]} : vector<8x16x128xf32> to vector<1x16x128xf32>
      %179 = vector.shape_cast %178 : vector<1x16x128xf32> to vector<16x128xf32>
      %180 = arith.mulf %179, %167 : vector<16x128xf32>
      %181 = arith.addf %180, %177 : vector<16x128xf32>
      %182 = vector.broadcast %173 : vector<16x1xf32> to vector<16x128xf32>
      %183 = arith.mulf %182, %181 : vector<16x128xf32>
      %cst_69 = arith.constant dense<0.000000e+00> : vector<128xf32>
      %184 = vector.multi_reduction <add>, %183, %cst_69 [0] : vector<16x128xf32> to vector<128xf32>
      %185 = vector.shape_cast %184 : vector<128xf32> to vector<1x128xf32>
      %186 = vector.extract_strided_slice %137 {offsets = [0, 3], sizes = [16, 1], strides = [1, 1]} : vector<32x8xf32> to vector<16x1xf32>
      %187 = vector.extract_strided_slice %137 {offsets = [16, 3], sizes = [16, 1], strides = [1, 1]} : vector<32x8xf32> to vector<16x1xf32>
      %188 = vector.extract_strided_slice %134 {offsets = [3, 0], sizes = [1, 128], strides = [1, 1]} : vector<8x128xf32> to vector<1x128xf32>
      %189 = vector.broadcast %188 : vector<1x128xf32> to vector<16x128xf32>
      %190 = vector.broadcast %186 : vector<16x1xf32> to vector<16x128xf32>
      %191 = arith.mulf %189, %190 : vector<16x128xf32>
      %192 = vector.extract_strided_slice %143 {offsets = [3, 0, 0], sizes = [1, 16, 128], strides = [1, 1, 1]} : vector<8x16x128xf32> to vector<1x16x128xf32>
      %193 = vector.shape_cast %192 : vector<1x16x128xf32> to vector<16x128xf32>
      %194 = arith.mulf %193, %181 : vector<16x128xf32>
      %195 = arith.addf %194, %191 : vector<16x128xf32>
      %196 = vector.broadcast %187 : vector<16x1xf32> to vector<16x128xf32>
      %197 = arith.mulf %196, %195 : vector<16x128xf32>
      %cst_70 = arith.constant dense<0.000000e+00> : vector<128xf32>
      %198 = vector.multi_reduction <add>, %197, %cst_70 [0] : vector<16x128xf32> to vector<128xf32>
      %199 = vector.shape_cast %198 : vector<128xf32> to vector<1x128xf32>
      %200 = vector.extract_strided_slice %137 {offsets = [0, 4], sizes = [16, 1], strides = [1, 1]} : vector<32x8xf32> to vector<16x1xf32>
      %201 = vector.extract_strided_slice %137 {offsets = [16, 4], sizes = [16, 1], strides = [1, 1]} : vector<32x8xf32> to vector<16x1xf32>
      %202 = vector.extract_strided_slice %134 {offsets = [4, 0], sizes = [1, 128], strides = [1, 1]} : vector<8x128xf32> to vector<1x128xf32>
      %203 = vector.broadcast %202 : vector<1x128xf32> to vector<16x128xf32>
      %204 = vector.broadcast %200 : vector<16x1xf32> to vector<16x128xf32>
      %205 = arith.mulf %203, %204 : vector<16x128xf32>
      %206 = vector.extract_strided_slice %143 {offsets = [4, 0, 0], sizes = [1, 16, 128], strides = [1, 1, 1]} : vector<8x16x128xf32> to vector<1x16x128xf32>
      %207 = vector.shape_cast %206 : vector<1x16x128xf32> to vector<16x128xf32>
      %208 = arith.mulf %207, %195 : vector<16x128xf32>
      %209 = arith.addf %208, %205 : vector<16x128xf32>
      %210 = vector.broadcast %201 : vector<16x1xf32> to vector<16x128xf32>
      %211 = arith.mulf %210, %209 : vector<16x128xf32>
      %cst_71 = arith.constant dense<0.000000e+00> : vector<128xf32>
      %212 = vector.multi_reduction <add>, %211, %cst_71 [0] : vector<16x128xf32> to vector<128xf32>
      %213 = vector.shape_cast %212 : vector<128xf32> to vector<1x128xf32>
      %214 = vector.extract_strided_slice %137 {offsets = [0, 5], sizes = [16, 1], strides = [1, 1]} : vector<32x8xf32> to vector<16x1xf32>
      %215 = vector.extract_strided_slice %137 {offsets = [16, 5], sizes = [16, 1], strides = [1, 1]} : vector<32x8xf32> to vector<16x1xf32>
      %216 = vector.extract_strided_slice %134 {offsets = [5, 0], sizes = [1, 128], strides = [1, 1]} : vector<8x128xf32> to vector<1x128xf32>
      %217 = vector.broadcast %216 : vector<1x128xf32> to vector<16x128xf32>
      %218 = vector.broadcast %214 : vector<16x1xf32> to vector<16x128xf32>
      %219 = arith.mulf %217, %218 : vector<16x128xf32>
      %220 = vector.extract_strided_slice %143 {offsets = [5, 0, 0], sizes = [1, 16, 128], strides = [1, 1, 1]} : vector<8x16x128xf32> to vector<1x16x128xf32>
      %221 = vector.shape_cast %220 : vector<1x16x128xf32> to vector<16x128xf32>
      %222 = arith.mulf %221, %209 : vector<16x128xf32>
      %223 = arith.addf %222, %219 : vector<16x128xf32>
      %224 = vector.broadcast %215 : vector<16x1xf32> to vector<16x128xf32>
      %225 = arith.mulf %224, %223 : vector<16x128xf32>
      %cst_72 = arith.constant dense<0.000000e+00> : vector<128xf32>
      %226 = vector.multi_reduction <add>, %225, %cst_72 [0] : vector<16x128xf32> to vector<128xf32>
      %227 = vector.shape_cast %226 : vector<128xf32> to vector<1x128xf32>
      %228 = vector.extract_strided_slice %137 {offsets = [0, 6], sizes = [16, 1], strides = [1, 1]} : vector<32x8xf32> to vector<16x1xf32>
      %229 = vector.extract_strided_slice %137 {offsets = [16, 6], sizes = [16, 1], strides = [1, 1]} : vector<32x8xf32> to vector<16x1xf32>
      %230 = vector.extract_strided_slice %134 {offsets = [6, 0], sizes = [1, 128], strides = [1, 1]} : vector<8x128xf32> to vector<1x128xf32>
      %231 = vector.broadcast %230 : vector<1x128xf32> to vector<16x128xf32>
      %232 = vector.broadcast %228 : vector<16x1xf32> to vector<16x128xf32>
      %233 = arith.mulf %231, %232 : vector<16x128xf32>
      %234 = vector.extract_strided_slice %143 {offsets = [6, 0, 0], sizes = [1, 16, 128], strides = [1, 1, 1]} : vector<8x16x128xf32> to vector<1x16x128xf32>
      %235 = vector.shape_cast %234 : vector<1x16x128xf32> to vector<16x128xf32>
      %236 = arith.mulf %235, %223 : vector<16x128xf32>
      %237 = arith.addf %236, %233 : vector<16x128xf32>
      %238 = vector.broadcast %229 : vector<16x1xf32> to vector<16x128xf32>
      %239 = arith.mulf %238, %237 : vector<16x128xf32>
      %cst_73 = arith.constant dense<0.000000e+00> : vector<128xf32>
      %240 = vector.multi_reduction <add>, %239, %cst_73 [0] : vector<16x128xf32> to vector<128xf32>
      %241 = vector.shape_cast %240 : vector<128xf32> to vector<1x128xf32>
      %242 = vector.extract_strided_slice %137 {offsets = [0, 7], sizes = [16, 1], strides = [1, 1]} : vector<32x8xf32> to vector<16x1xf32>
      %243 = vector.extract_strided_slice %137 {offsets = [16, 7], sizes = [16, 1], strides = [1, 1]} : vector<32x8xf32> to vector<16x1xf32>
      %244 = vector.extract_strided_slice %134 {offsets = [7, 0], sizes = [1, 128], strides = [1, 1]} : vector<8x128xf32> to vector<1x128xf32>
      %245 = vector.broadcast %244 : vector<1x128xf32> to vector<16x128xf32>
      %246 = vector.broadcast %242 : vector<16x1xf32> to vector<16x128xf32>
      %247 = arith.mulf %245, %246 : vector<16x128xf32>
      %248 = vector.extract_strided_slice %143 {offsets = [7, 0, 0], sizes = [1, 16, 128], strides = [1, 1, 1]} : vector<8x16x128xf32> to vector<1x16x128xf32>
      %249 = vector.shape_cast %248 : vector<1x16x128xf32> to vector<16x128xf32>
      %250 = arith.mulf %249, %237 : vector<16x128xf32>
      %251 = arith.addf %250, %247 : vector<16x128xf32>
      %252 = vector.broadcast %243 : vector<16x1xf32> to vector<16x128xf32>
      %253 = arith.mulf %252, %251 : vector<16x128xf32>
      %cst_74 = arith.constant dense<0.000000e+00> : vector<128xf32>
      %254 = vector.multi_reduction <add>, %253, %cst_74 [0] : vector<16x128xf32> to vector<128xf32>
      %255 = vector.shape_cast %254 : vector<128xf32> to vector<1x128xf32>
      %256 = tpu.concatenate %157, %171, %185, %199, %213, %227, %241, %255 in 0 : vector<1x128xf32>, vector<1x128xf32>, vector<1x128xf32>, vector<1x128xf32>, vector<1x128xf32>, vector<1x128xf32>, vector<1x128xf32>, vector<1x128xf32> -> vector<8x128xf32>
      %257 = arith.index_cast %129 : i32 to index
      %c0_75 = arith.constant 0 : index
      %258 = vector.load %arg14[%257, %c0_75] : memref<40x128xf32, #tpu.memory_space<vmem>>, vector<8x128xf32>
      tpu.vector_store %arg14[%257, %c0_75], %256 {strides = array<i32>} : memref<40x128xf32, #tpu.memory_space<vmem>>, vector<8x128xf32>,
      scf.yield %251 : vector<16x128xf32>
    }
    %c5_i32_42 = arith.constant 5 : i32
    %c0_43 = arith.constant 0 : index
    %c0_44 = arith.constant 0 : index
    %102 = vector.load %arg19[%c0_43, %c0_44] : memref<16x128xf32, #tpu.memory_space<vmem>>, vector<16x128xf32>
    tpu.vector_store %arg19[%c0_43, %c0_44], %101 {strides = array<i32>} : memref<16x128xf32, #tpu.memory_space<vmem>>, vector<16x128xf32>,
    %c0_45 = arith.constant 0 : index
    %c0_46 = arith.constant 0 : index
    %103 = vector.load %arg14[%c0_45, %c0_46] : memref<40x128xf32, #tpu.memory_space<vmem>>, vector<40x128xf32>
    %c0_47 = arith.constant 0 : index
    %c0_48 = arith.constant 0 : index
    %104 = vector.load %arg16[%c0_47, %c0_48] : memref<40x128xbf16, #tpu.memory_space<vmem>>, vector<40x128xbf16>
    %105 = arith.extf %104 : vector<40x128xbf16> to vector<40x128xf32>
    %c0_49 = arith.constant 0 : index
    %c0_50 = arith.constant 0 : index
    %106 = vector.load %arg11[%c0_49, %c0_50] : memref<1x128xf32, #tpu.memory_space<vmem>>, vector<1x128xf32>
    %107 = vector.broadcast %106 : vector<1x128xf32> to vector<40x128xf32>
    %108 = arith.mulf %105, %107 : vector<40x128xf32>
    %109 = arith.addf %103, %108 : vector<40x128xf32>
    %c0_51 = arith.constant 0 : index
    %c0_52 = arith.constant 0 : index
    %110 = vector.load %arg17[%c0_51, %c0_52] : memref<40x128xbf16, #tpu.memory_space<vmem>>, vector<40x128xbf16>
    %111 = arith.extf %110 : vector<40x128xbf16> to vector<40x128xf32>
    %112 = arith.negf %111 : vector<40x128xf32>
    %113 = math.exp %112 : vector<40x128xf32>
    %cst_53 = arith.constant 1.000000e+00 : f32
    %114 = vector.broadcast %cst_53 : f32 to vector<40x128xf32>
    %115 = arith.addf %114, %113 : vector<40x128xf32>
    %116 = arith.divf %114, %115 : vector<40x128xf32>
    %117 = arith.mulf %111, %116 : vector<40x128xf32>
    %118 = arith.mulf %109, %117 : vector<40x128xf32>
    %119 = arith.truncf %118 : vector<40x128xf32> to vector<40x128xbf16>
    %c0_54 = arith.constant 0 : index
    %c0_55 = arith.constant 0 : index
    %120 = vector.load %arg12[%c0_54, %c0_55] : memref<128x128xbf16, #tpu.memory_space<vmem>>, vector<128x128xbf16>
    %cst_56 = arith.constant dense<0.000000e+00> : vector<40x128xf32>
    %121 = tpu.matmul %119, %120, %cst_56 {dimension_numbers = #tpu.dot_dimension_numbers<[1], [0], [0], [1], [0, 0, 1, 1], [], []>} : vector<40x128xbf16>, vector<128x128xbf16>, vector<40x128xf32> -> vector<40x128xf32>
    %c0_57 = arith.constant 0 : index
    %c0_58 = arith.constant 0 : index
    %c0_59 = arith.constant 0 : index
    %122 = vector.load %arg2[%c0_57, %c0_58, %c0_59] : memref<1x40x128xf32, #tpu.memory_space<vmem>>, vector<1x40x128xf32>
    %123 = vector.shape_cast %122 : vector<1x40x128xf32> to vector<40x128xf32>
    %124 = arith.addf %123, %121 : vector<40x128xf32>
    %c0_60 = arith.constant 0 : index
    %c0_61 = arith.constant 0 : index
    %c0_62 = arith.constant 0 : index
    %125 = vector.load %arg13[%c0_60, %c0_61, %c0_62] : memref<1x40x128xf32, #tpu.memory_space<vmem>>, vector<1x40x128xf32>
    %126 = vector.shape_cast %125 : vector<1x40x128xf32> to vector<40x128xf32>
    %127 = vector.shape_cast %124 : vector<40x128xf32> to vector<1x40x128xf32>
    tpu.vector_store %arg13[%c0_60, %c0_61, %c0_62], %127 {strides = array<i32>} : memref<1x40x128xf32, #tpu.memory_space<vmem>>, vector<1x40x128xf32>,
    return
  }
  func.func @transform_0(%arg0: i32, %arg1: i32) -> (i32, i32, i32) {
    %c0_i32 = arith.constant 0 : i32
    %c0_i32_0 = arith.constant 0 : i32
    return %arg0, %arg1, %c0_i32 : i32, i32, i32
  }
  func.func @transform_1(%arg0: i32, %arg1: i32) -> (i32, i32) {
    %c0_i32 = arith.constant 0 : i32
    %c0_i32_0 = arith.constant 0 : i32
    %c0_i32_1 = arith.constant 0 : i32
    return %c0_i32, %c0_i32_0 : i32, i32
  }
  func.func @transform_2(%arg0: i32, %arg1: i32) -> (i32, i32) {
    %c0_i32 = arith.constant 0 : i32
    %c0_i32_0 = arith.constant 0 : i32
    %c0_i32_1 = arith.constant 0 : i32
    return %c0_i32, %c0_i32_0 : i32, i32
  }
  func.func @transform_3(%arg0: i32, %arg1: i32) -> (i32, i32) {
    %c0_i32 = arith.constant 0 : i32
    %c0_i32_0 = arith.constant 0 : i32
    %c0_i32_1 = arith.constant 0 : i32
    return %c0_i32, %c0_i32_0 : i32, i32
  }
  func.func @transform_4(%arg0: i32, %arg1: i32) -> (i32, i32) {
    %c0_i32 = arith.constant 0 : i32
    %c0_i32_0 = arith.constant 0 : i32
    %c0_i32_1 = arith.constant 0 : i32
    return %c0_i32, %c0_i32_0 : i32, i32
  }
  func.func @transform_5(%arg0: i32, %arg1: i32) -> (i32, i32) {
    %c0_i32 = arith.constant 0 : i32
    %c0_i32_0 = arith.constant 0 : i32
    %c0_i32_1 = arith.constant 0 : i32
    return %c0_i32, %c0_i32_0 : i32, i32
  }
  func.func @transform_6(%arg0: i32, %arg1: i32) -> (i32, i32) {
    %c0_i32 = arith.constant 0 : i32
    %c0_i32_0 = arith.constant 0 : i32
    %c0_i32_1 = arith.constant 0 : i32
    return %c0_i32, %c0_i32_0 : i32, i32
  }
  func.func @transform_7(%arg0: i32, %arg1: i32) -> (i32, i32) {
    %c0_i32 = arith.constant 0 : i32
    %c0_i32_0 = arith.constant 0 : i32
    %c0_i32_1 = arith.constant 0 : i32
    return %c0_i32, %c0_i32_0 : i32, i32
  }
  func.func @transform_8(%arg0: i32, %arg1: i32) -> (i32, i32) {
    %c0_i32 = arith.constant 0 : i32
    %c0_i32_0 = arith.constant 0 : i32
    %c0_i32_1 = arith.constant 0 : i32
    return %c0_i32, %c0_i32_0 : i32, i32
  }
  func.func @transform_9(%arg0: i32, %arg1: i32) -> (i32, i32) {
    %c0_i32 = arith.constant 0 : i32
    %c0_i32_0 = arith.constant 0 : i32
    %c0_i32_1 = arith.constant 0 : i32
    return %c0_i32, %c0_i32_0 : i32, i32
  }
  func.func @transform_10(%arg0: i32, %arg1: i32) -> (i32, i32) {
    %c0_i32 = arith.constant 0 : i32
    %c0_i32_0 = arith.constant 0 : i32
    %c0_i32_1 = arith.constant 0 : i32
    return %c0_i32, %c0_i32_0 : i32, i32
  }
  func.func @transform_11(%arg0: i32, %arg1: i32) -> (i32, i32, i32) {
    %c0_i32 = arith.constant 0 : i32
    %c0_i32_0 = arith.constant 0 : i32
    return %arg0, %arg1, %c0_i32 : i32, i32, i32
  }
}

</mosaic_0001>

<bundles_post_ra>
// kernel: tpu_custom_call.1
= control target key start
LH: loop header
LB: loop body
LE: loop exit
PB: predicated region body
PF: predicated region fallthrough
CT: control target
= control target key end

     0   :  { %s3830_s0 = inlined_call_operand.vmem [shape: f32[2,40,128], index: 0, kind: input, shape index: {}]   ;;  %s3831_s1 = inlined_call_operand.vmem [shape: f32[1,128], index: 1, kind: input, shape index: {}]   ;;  %s3832_s2 = inlined_call_operand.vmem [shape: f32[1,128], index: 2, kind: input, shape index: {}]   ;;  %s3833_s3 = inlined_call_operand.vmem [shape: bf16[128,256], index: 3, kind: input, shape index: {}]   ;;  %s3834_s4 = inlined_call_operand.hbm [shape: f32[4,128], index: 4, kind: input, shape index: {}]   ;;  %s3835_s5 = inlined_call_operand.hbm [shape: f32[1,128], index: 5, kind: input, shape index: {}]   ;;  %s3836_s6 = inlined_call_operand.vmem [shape: bf16[128,160], index: 6, kind: input, shape index: {}]   ;;  %s3837_s7 = inlined_call_operand.vmem [shape: f32[1,128], index: 7, kind: input, shape index: {}]   ;;  %s3838_s8 = inlined_call_operand.vmem [shape: f32[16,128], index: 8, kind: input, shape index: {}]   ;;  %s3839_s9 = inlined_call_operand.vmem [shape: f32[1,128], index: 9, kind: input, shape index: {}]   ;;  %s3840_s10 = inlined_call_operand.hbm [shape: bf16[128,128], index: 10, kind: input, shape index: {}]   ;;  %s3841_s11 = inlined_call_operand.hbm [shape: f32[2,40,128], index: 11, kind: output, shape index: {}]  }
   0x1   :  { %3851 = sst [smem:[#allocation24_spill]] %s3835_s5 }
   0x2   :  { %16 = vsyncpa [#allocation9], 0 }
   0x3   :  { %17 = vsyncpa [#allocation12], 0 }
   0x4   :  { %18 = vsyncpa [#allocation10], 0 }
   0x5   :  { %20 = vsyncpa [#allocation10 + $0x1], 0  ;;  %s2986_s17 = smov 0   ;;  %s2988_s18 = smov 0  }
   0x6   :  { %s2990_s19 = smov 0   ;;  %s2992_s20 = smov 0  }
   0x7   :  { %s2994_s21 = smov 0   ;;  %s2996_s22 = smov 0  }
   0x8 LB: > { %3852 = sst [smem:[#allocation18_spill]] %s2872_s17  ;;  %s2205_s23 = sadd.s32 4294967295, %s2892_s22   ;;  %s2892_s22 = sphi %s2996_s22, %s26_s22   ;;  %s2888_s21 = sphi %s2994_s21, %s3877_s21   ;;  %s2884_s20 = sphi %s2992_s20, %s3876_s20   ;;  %s2880_s19 = sphi %s2990_s19, %s3875_s19   ;;  %s2876_s18 = sphi %s2988_s18, %s3879_s18   ;;  %s2872_s17 = sphi %s2986_s17, %s3878_s17  }
   0x9   : > { %3853 = sst [smem:[#allocation19_spill]] %s2880_s19  ;;  %s2206_s24 = sadd.s32 4294967294, %s2892_s22  }
   0xa   : > { %3854 = sst [smem:[#allocation20_spill]] %s2888_s21  ;;  %s38_s25 = sadd.s32 1, %s2888_s21 }
   0xb   : > { %s285_s26 = sadd.s32 1, %s2880_s19  ;;  %p40_p0 = scmp.ge.s32.totalorder %s38_s25, 2 }
   0xc   : > { %p295_p1 = scmp.ne.s32.totalorder %s2880_s19, %s2876_s18  ;;  %p296_p2 = scmp.eq.s32.totalorder %s2205_s23, 1 }
   0xd   : > { %p301_p3 = scmp.ne.s32.totalorder %s2876_s18, %s2872_s17  ;;  %s3881_s25 = smov (%p40_p0, %s38_s25), 0 }
   0xe   : > { %3855 = sst [smem:[#allocation21_spill]] %s3881_s25  ;;  %p3026_p4 = por %p296_p2, %p295_p1 }
   0xf   : > { %p302_p5 = scmp.eq.s32.totalorder %s2206_s24, 1  ;;  %s280_s28 = ssub.s32 %s2888_s21, %s3881_s25 }
  0x10   : > { %s3856_s27 = scalar_select %p3026_p4, 1, 0 }
  0x11   : > { %p2207_p6 = scmp.ge.s32.totalorder %s2892_s22, 1  ;;  %p283_p7 = scmp.eq.s32.totalorder %s280_s28, 0 }
  0x12   : > { %p3033_p8 = por %p302_p5, %p301_p3  ;;  %p309_p9 = scmp.lt.s32.totalorder %s2892_s22, 3 }
  0x13   : > { %s3039_s30 = scalar_select %p283_p7, %s2880_s19, %s285_s26  }
  0x14   : > { %s3857_s29 = scalar_select %p3033_p8, 1, 0 }
  0x15   : > { %3859 = sst [smem:[#allocation23_spill]] %s3039_s30  ;;  %p3041_p10 = pnand %p2207_p6, %p309_p9 }
  0x16   : > { %3858 = sst [smem:[#allocation22_spill]] %s3857_s29  ;;  %p3045_p11 = scmp.eq.s32.totalorder %s2205_s23, 0 }
  0x17   : > { %s3860_s12 = scalar_select %p3041_p10, 1, 0 }
  0x18   : > { %s3861_s13 = scalar_select %p3045_p11, 1, 0 }
  0x19   : > { %p2403_p12 = pneg %p3041_p10  ;;  %s2906_s14 = smov [#allocation11]  }
  0x1a   : > { %s342_s15 = sshll.u32 %s2906_s14, 4  ;;  %s2907_s24 = smov [#allocation8]   ;;  %s343_s15 = int_to_ptr.vmem [resolvable:$true] %s342_s15 }
  0x1b   : > { %p3053_p13 = pnand %p3045_p11, %p2403_p12  ;;  %s331_s26 = sshll.u32 %s2907_s24, 4  ;;  %s3057_s26 = int_to_ptr.vmem [resolvable:$true] %s331_s26 }
  0x1c   : > { %s3863_s5 = sld [smem:[#allocation24_spill]] }
  0x1d   : > { %p3067_p1 = pneg %p3053_p13 }
  0x22   : > { %s2710_s25 = scalar_lea.hbm %s3863_s5, 16 }
  0x23   : > { %p2711_p0 = scmp.ne.s32.totalorder %s3863_s5, %s2710_s25  ;;  %p2717_p5 = scmp.lt.u32.totalorder %s2710_s25, %s3863_s5 }
  0x25   : > { %p2713_p2 = pnand %p3067_p1, %p2711_p0 }
  0x27   : > { %p2714_p3 = pneg %p2713_p2 }
  0x29   : > { %p2719_p6 = pnand %p2717_p5, %p2714_p3 }
  0x2b   : > { %2722 = shalt.err (!%p2719_p6)
}
  0x2c   : > { %s2723_s23 = scalar_lea.vmem %s343_s15, 16  ;;  %s2730_s21 = scalar_lea.vmem %s343_s15, 32 }
  0x2d   : > { %p2724_p7 = scmp.ne.s32.totalorder %s343_s15, %s2723_s23  ;;  %p2731_p8 = scmp.lt.s32.totalorder %s343_s15, %s343_s15 }
  0x2e   : > { %p2732_p4 = scmp.lt.s32.totalorder %s2730_s21, %s2723_s23 }
  0x2f   : > { %p2726_p9 = pnand %p2724_p7, %p3067_p1 }
  0x30   : > { %p2733_p11 = por %p2732_p4, %p2731_p8 }
  0x31   : > { %p2727_p12 = pneg %p2726_p9 }
  0x33   : > { %p2734_p10 = pnand %p2733_p11, %p2727_p12 }
  0x35   : > { %2737 = shalt.err (!%p2734_p10)
}
  0x36   : > { %2409 = dma.hbm_to_vmem [thread:$0]  (!%p3053_p13), %s3863_s5, 16, %s343_s15, [#allocation12]  }
  0x37   : > { %s2738_s24 = scalar_lea.hbm %s3834_s4, 64 }
  0x38   : > { %p2739_p0 = scmp.ne.s32.totalorder %s3834_s4, %s2738_s24  ;;  %p2745_p8 = scmp.lt.u32.totalorder %s2738_s24, %s3834_s4 }
  0x3a   : > { %p2741_p2 = pnand %p2739_p0, %p3067_p1 }
  0x3c   : > { %p2742_p4 = pneg %p2741_p2 }
  0x3e   : > { %p2747_p10 = pnand %p2745_p8, %p2742_p4 }
  0x40   : > { %2750 = shalt.err (!%p2747_p10)
}
  0x41   : > { %s2751_s15 = scalar_lea.vmem %s3057_s26, 64  ;;  %p2759_p6 = scmp.lt.s32.totalorder %s3057_s26, %s3057_s26 }
  0x42   : > { %p2752_p11 = scmp.ne.s32.totalorder %s3057_s26, %s2751_s15  ;;  %p2760_p7 = scmp.lt.s32.totalorder %s2751_s15, %s2751_s15 }
  0x44   : > { %p2754_p3 = pnand %p2752_p11, %p3067_p1  ;;  %p2761_p9 = por %p2760_p7, %p2759_p6 }
  0x46   : > { %p2755_p5 = pneg %p2754_p3 }
  0x48   : > { %p2762_p12 = pnand %p2761_p9, %p2755_p5 }
  0x4a   : > { %2765 = shalt.err (!%p2762_p12)
}
  0x4b   : > { %2406 = dma.hbm_to_vmem [thread:$0]  (!%p3053_p13), %s3834_s4, 64, %s3057_s26, [#allocation9]  }
  0x4c   : > { %s2908_s30 = smov [#allocation13]   ;;  %s2766_s24 = scalar_lea.hbm %s3840_s10, 1024 }
  0x4d   : > { %s364_s28 = sshll.u32 %s2908_s30, 4  ;;  %p2767_p0 = scmp.ne.s32.totalorder %s3840_s10, %s2766_s24  ;;  %s365_s28 = int_to_ptr.vmem [resolvable:$true] %s364_s28 }
  0x4e   : > { %p2773_p8 = scmp.lt.u32.totalorder %s2766_s24, %s3840_s10 }
  0x4f   : > { %p2769_p2 = pnand %p2767_p0, %p3067_p1 }
  0x51   : > { %p2770_p4 = pneg %p2769_p2 }
  0x53   : > { %p2775_p10 = pnand %p2773_p8, %p2770_p4 }
  0x55   : > { %2778 = shalt.err (!%p2775_p10)
}
  0x56   : > { %s2779_s26 = scalar_lea.vmem %s365_s28, 1024  ;;  %p2787_p6 = scmp.lt.s32.totalorder %s365_s28, %s365_s28 }
  0x57   : > { %p2780_p11 = scmp.ne.s32.totalorder %s365_s28, %s2779_s26  ;;  %p2788_p7 = scmp.lt.s32.totalorder %s2779_s26, %s2779_s26 }
  0x59   : > { %p2782_p3 = pnand %p2780_p11, %p3067_p1  ;;  %p2789_p9 = por %p2788_p7, %p2787_p6 }
  0x5b   : > { %p2783_p5 = pneg %p2782_p3 }
  0x5d   : > { %p2790_p12 = pnand %p2789_p9, %p2783_p5 }
  0x5f   : > { %2793 = shalt.err (!%p2790_p12)
}
  0x60   : > { %s2909_s17 = smov 64   ;;  %s2910_s29 = smov 4  }
  0x61   : > { %2412 = dma.hbm_to_vmem [thread:$0]  (!%p3053_p13), %s3840_s10, 1024, %s365_s28, [#allocation12], %s2909_s17, %s2909_s17, %s2910_s29  }
  0x62   : > { %p3865_p0 = scmp.ne.s32.totalorder %s3860_s12, 0 }
  0x63   : > { %p3866_p2 = scmp.ne.s32.totalorder (!%p3865_p0), %s3861_s13, 0 }
  0x64   : > { %393 = sbr.rel (%p3865_p0) target bundleno = 1628 (0x65c), region = 64 }
  0x6b   : > { %2859 = dma.done.wait (%p3866_p2), [#allocation9], 64  }
  0x6c   : > { %2861 = vsyncadd (%p3866_p2), [#allocation9], 4294967232 }
  0x6d   : > { %2863 = dma.done.wait (%p3866_p2), [#allocation12], 1040  }
  0x6e   : > { %2865 = vsyncadd (%p3866_p2), [#allocation12], 4294966256  ;;  %p446_p1 = scmp.lt.s32.totalorder %s2884_s20, 1  ;;  %s442_s13 = sand.u32 1, %s2876_s18   ;;  %v2516_v5 = vld [vmem:[%s3833_s3 + $0x4] ss:$8 sps:$4 sm:$0xff]  }
  0x6f   : > { %v2518_v6 = vld [vmem:[%s3833_s3] ss:$8 sps:$4 sm:$0xff]   ;;  %s3155_s15 = smul.u32 40, %s442_s13  ;;  %662 = vmatprep.subr.bf16.mxu0 %v2516_v5  ;;  %v2519_v27 = vld [vmem:[%s3833_s3 + $0x14] ss:$8 sps:$4 sm:$0xff]   ;;  %v2911_v38 = vmov 0  }
  0x70   : > { %s447_s16 = scalar_select %p446_p1, %s2884_s20, 1  ;;  %663 = vmatpush1.bf16.msra.mxu0 %v2518_v6  ;;  %v2521_v28 = vld [vmem:[%s3833_s3 + $0x10] ss:$8 sps:$4 sm:$0xff]   ;;  %v2522_v29 = vld [vmem:[%s3833_s3 + $0x24] ss:$8 sps:$4 sm:$0xff]   ;;  %694 = vmatprep.mubr.bf16.mxu0 %v2911_v38  ;;  %vm790_vm0 = vcmask 1046528  }
  0x71   : > { %664 = vmatprep.subr.bf16.mxu0 %v2519_v27  ;;  %v2524_v30 = vld [vmem:[%s3833_s3 + $0x20] ss:$8 sps:$4 sm:$0xff]   ;;  %v2525_v31 = vld [vmem:[%s3833_s3 + $0x34] ss:$8 sps:$4 sm:$0xff]   ;;  %v2527_v32 = vld [vmem:[%s3833_s3 + $0x30] ss:$8 sps:$4 sm:$0xff]   ;;  %1180 = vmatprep.mubr.bf16.mxu1 %v2911_v38 }
  0x72   : > { %s2387_s12 = smul.u32 40, %s447_s16  ;;  %v2528_v33 = vld [vmem:[%s3833_s3 + $0x44] ss:$8 sps:$4 sm:$0xff]   ;;  %v2530_v34 = vld [vmem:[%s3833_s3 + $0x40] ss:$8 sps:$4 sm:$0xff]   ;;  %vm830_vm1 = vcmask 1045504  }
  0x73   : > { %v2531_v35 = vld [vmem:[%s3833_s3 + $0x54] ss:$8 sps:$4 sm:$0xff]   ;;  %v2533_v36 = vld [vmem:[%s3833_s3 + $0x50] ss:$8 sps:$4 sm:$0xff]   ;;  %v2534_v37 = vld [vmem:[%s3833_s3 + $0x64] ss:$8 sps:$4 sm:$0xff]  }
  0x74   : > { %s3139_s19 = scalar_lea.vmem %s3830_s0, %s2387_s12  ;;  %665 = vmatpush1.bf16.msra.mxu0 %v2521_v28  ;;  %v2536_v39 = vld [vmem:[%s3833_s3 + $0x60] ss:$8 sps:$4 sm:$0xff]   ;;  %v2537_v40 = vld [vmem:[%s3833_s3 + $0x74] ss:$8 sps:$4 sm:$0xff]   ;;  %v2539_v41 = vld [vmem:[%s3833_s3 + $0x70] ss:$8 sps:$4 sm:$0xff]  }
  0x75   : > { %v464_v0 = vld [vmem:[%s3139_s19] sm:$0xff]  ;;  %v466_v1 = vld [vmem:[%s3139_s19 + $0x10] sm:$0xff]  ;;  %v465_v2 = vld [vmem:[%s3139_s19 + $0x8] sm:$0xff]  ;;  %666 = vmatprep.subr.bf16.mxu0 %v2522_v29  ;;  %vm868_vm2 = vcmask 1044480   ;;  %vm1317_vm3 = vcmask 1042432   ;;  %vm1345_vm8 = vcmask 261120  }
  0x76   : > { %469 = vadd.xlane.f32.xlu0 %v464_v0  ;;  %473 = vadd.xlane.f32.xlu1 %v466_v1  ;;  %v467_v3 = vld [vmem:[%s3139_s19 + $0x18] sm:$0xff]  ;;  %v468_v4 = vld [vmem:[%s3139_s19 + $0x20] sm:$0xff]  ;;  %vm951_vm4 = vsmask.f32 1280  ;;  %vm952_vm5 = vsmask.f32 5392 }
  0x77   : > { %vm3375_vm6 = vmor %vm951_vm4, %vm952_vm5  ;;  %vm1038_vm7 = vsmask.f32 5376  ;;  %s3457_s17 = scalar_lea.vmem [#allocation14], %s3155_s15  ;;  %s3463_s29 = smov 0  }
  0x78   : > { %667 = vmatpush1.bf16.msra.mxu0 %v2524_v30 }
  0x79   : > { %668 = vmatprep.subr.bf16.mxu0 %v2525_v31 }
  0x7a   : > { %471 = vadd.xlane.f32.xlu0 %v465_v2  ;;  %475 = vadd.xlane.f32.xlu1 %v467_v3 }
  0x7c   : > { %669 = vmatpush1.bf16.msra.mxu0 %v2527_v32 }
  0x7d   : > { %670 = vmatprep.subr.bf16.mxu0 %v2528_v33 }
  0x7e   : > { %477 = vadd.xlane.f32.xlu0 %v468_v4 }
  0x80   : > { %671 = vmatpush1.bf16.msra.mxu0 %v2530_v34 }
  0x81   : > { %672 = vmatprep.subr.bf16.mxu0 %v2531_v35  ;;  %v2542_v35 = vld [vmem:[%s3836_s6] ss:$8 sps:$4 sm:$0xff]  }
  0x84   : > { %673 = vmatpush1.bf16.msra.mxu0 %v2533_v36  ;;  %v2545_v36 = vld [vmem:[%s3836_s6 + $0x10] ss:$8 sps:$4 sm:$0xff]  }
  0x85   : > { %674 = vmatprep.subr.bf16.mxu0 %v2534_v37  ;;  %v2546_v37 = vld [vmem:[%s3836_s6 + $0x24] ss:$8 sps:$4 sm:$0xff]  }
  0x88   : > { %675 = vmatpush1.bf16.msra.mxu0 %v2536_v39  ;;  %v2548_v39 = vld [vmem:[%s3836_s6 + $0x20] ss:$8 sps:$4 sm:$0xff]  }
  0x89   : > { %676 = vmatprep.subr.bf16.mxu0 %v2537_v40  ;;  %v2549_v40 = vld [vmem:[%s3836_s6 + $0x34] ss:$8 sps:$4 sm:$0xff]  }
  0x8c   : > { %677 = vmatpush1.bf16.msra.mxu0 %v2539_v41  ;;  %v2551_v41 = vld [vmem:[%s3836_s6 + $0x30] ss:$8 sps:$4 sm:$0xff]  }
 0x103   : > { %v470_v7 = vpop.xlane.xlu0 %469  ;;  %v474_v8 = vpop.xlane.xlu1 %473 }
 0x104   : > { %v479_v9 = vmul.f32 0.03125, %v470_v7  ;;  %v481_v10 = vmul.f32 0.03125, %v474_v8 }
 0x106   : > { %v3157_v11 = vsub.f32 %v464_v0, %v479_v9  ;;  %v3159_v12 = vsub.f32 %v466_v1, %v481_v10  ;;  %v504_v42 = vmul.f32 96.0, %v479_v9  ;;  %v506_v44 = vmul.f32 96.0, %v481_v10 }
 0x107   : > { %v472_v13 = vpop.xlane.xlu0 %471  ;;  %v476_v14 = vpop.xlane.xlu1 %475 }
 0x108   : > { %v480_v15 = vmul.f32 0.03125, %v472_v13  ;;  %v489_v16 = vmul.f32 %v3157_v11, %v3157_v11  ;;  %v482_v17 = vmul.f32 0.03125, %v476_v14  ;;  %v491_v18 = vmul.f32 %v3159_v12, %v3159_v12 }
 0x109   : > { %v509_v43 = vmul.f32 %v504_v42, %v479_v9  ;;  %v511_v50 = vmul.f32 %v506_v44, %v481_v10  ;;  %v2217_v10 = vld [vmem:[%s3831_s1] ss:$0 sm:$0xff]  ;;  %v2552_v42 = vld [vmem:[%s3836_s6 + $0x44] ss:$8 sps:$4 sm:$0xff]   ;;  %v2555_v44 = vld [vmem:[%s3836_s6 + $0x54] ss:$8 sps:$4 sm:$0xff]  }
 0x10a   : > { %494 = vadd.xlane.f32.xlu1 %v489_v16  ;;  %v3165_v19 = vsub.f32 %v465_v2, %v480_v15  ;;  %v3167_v20 = vsub.f32 %v467_v3, %v482_v17  ;;  %v505_v45 = vmul.f32 96.0, %v480_v15  ;;  %v507_v48 = vmul.f32 96.0, %v482_v17 }
 0x10b   : > { %v478_v21 = vpop.xlane.xlu0 %477 }
 0x10c   : > { %v483_v22 = vmul.f32 0.03125, %v478_v21  ;;  %v490_v23 = vmul.f32 %v3165_v19, %v3165_v19  ;;  %v492_v24 = vmul.f32 %v3167_v20, %v3167_v20  ;;  %v510_v51 = vmul.f32 %v505_v45, %v480_v15  ;;  %v2557_v45 = vld [vmem:[%s3836_s6 + $0x50] ss:$8 sps:$4 sm:$0xff]  }
 0x10d   : > { %v512_v58 = vmul.f32 %v507_v48, %v482_v17  ;;  %v2561_v48 = vld [vmem:[%s3836_s6 + $0x74] ss:$8 sps:$4 sm:$0xff]  }
 0x10e   : > { %498 = vadd.xlane.f32.xlu1 %v491_v18  ;;  %496 = vadd.xlane.f32.xlu0 %v490_v23  ;;  %v3173_v25 = vsub.f32 %v468_v4, %v483_v22  ;;  %v508_v52 = vmul.f32 96.0, %v483_v22  ;;  %v2218_v18 = vld [vmem:[%s3832_s2] ss:$0 sm:$0xff] }
 0x110   : > { %v493_v26 = vmul.f32 %v3173_v25, %v3173_v25  ;;  %v513_v61 = vmul.f32 %v508_v52, %v483_v22 }
 0x112   : > { %500 = vadd.xlane.f32.xlu0 %v492_v24  ;;  %502 = vadd.xlane.f32.xlu1 %v493_v26 }
 0x197   : > { %v495_v46 = vpop.xlane.xlu1 %494 }
 0x198   : > { %v514_v47 = vsub.f32 %v495_v46, %v509_v43  ;;  %v2554_v43 = vld [vmem:[%s3836_s6 + $0x40] ss:$8 sps:$4 sm:$0xff]   ;;  %v2558_v46 = vld [vmem:[%s3836_s6 + $0x64] ss:$8 sps:$4 sm:$0xff]  }
 0x19a   : > { %v519_v49 = vmul.f32 0.03125, %v514_v47  ;;  %v2560_v47 = vld [vmem:[%s3836_s6 + $0x60] ss:$8 sps:$4 sm:$0xff]  }
 0x19b   : > { %v499_v53 = vpop.xlane.xlu1 %498  ;;  %v497_v54 = vpop.xlane.xlu0 %496 }
 0x19c   : > { %v524_v55 = vadd.f32 1e-05, %v519_v49  ;;  %v516_v56 = vsub.f32 %v499_v53, %v511_v50  ;;  %v515_v57 = vsub.f32 %v497_v54, %v510_v51  ;;  %v2563_v49 = vld [vmem:[%s3836_s6 + $0x70] ss:$8 sps:$4 sm:$0xff]   ;;  %v758_v50 = vlaneseq  ;;  %v750_v53 = vld [vmem:[#allocation8] sm:$0xf] }
 0x19e   : > { %2564 = vrsqrt.f32 %v524_v55  ;;  %v521_v59 = vmul.f32 0.03125, %v516_v56  ;;  %v520_v60 = vmul.f32 0.03125, %v515_v57  ;;  %v3282_v51 = vshrl.u32 %v758_v50, 7 }
 0x19f   : > { %v503_v62 = vpop.xlane.xlu1 %502  ;;  %v501_v63 = vpop.xlane.xlu0 %500 }
 0x1a0   : > { %v526_v0 = vadd.f32 1e-05, %v521_v59  ;;  %v525_v1 = vadd.f32 1e-05, %v520_v60  ;;  %v518_v2 = vsub.f32 %v503_v62, %v513_v61  ;;  %v517_v3 = vsub.f32 %v501_v63, %v512_v58  ;;  %v3303_v62 = vld [vmem:[#allocation11] ss:$0 sm:$0xff] }
 0x1a1   : > { %v776_v52 = vsub.s32 1, %v3282_v51  ;;  %v3286_v54 = vsub.s32 0, %v3282_v51  ;;  %v816_v55 = vsub.s32 2, %v3282_v51  ;;  %v856_v59 = vsub.s32 3, %v3282_v51 }
 0x1a2   : > { %2566 = vrsqrt.f32 %v526_v0  ;;  %v522_v4 = vmul.f32 0.03125, %v517_v3  ;;  %v523_v5 = vmul.f32 0.03125, %v518_v2 }
 0x1a3   : > { %2568 = vrsqrt.f32 %v525_v1  ;;  %v3291_v56 = vrot.slane %v750_v53, %v776_v52  ;;  %v3294_v57 = vrot.slane %v750_v53, %v3286_v54  ;;  %v3298_v58 = vrot.slane %v750_v53, %v816_v55 }
 0x1a4   : > { %v527_v6 = vadd.f32 1e-05, %v522_v4  ;;  %v528_v7 = vadd.f32 1e-05, %v523_v5  ;;  %v3308_v0 = vrot.slane %v750_v53, %v856_v59 }
 0x1a5   : > { %v778_v60 = vmul.f32 0.0, %v3291_v56  ;;  %v762_v61 = vmul.f32 0.0, %v3294_v57  ;;  %v818_v63 = vmul.f32 0.0, %v3298_v58 }
 0x1a6   : > { %2570 = vrsqrt.f32 %v527_v6 }
 0x1a7   : > { %2572 = vrsqrt.f32 %v528_v7  ;;  %v791_v3 = vrot.slane %v778_v60, 1  ;;  %v768_v7 = vadd.f32 %v3303_v62, %v762_v61 }
 0x1a8   : > { %v2565_v8 = vpop.eup %2564 }
 0x1a9   : > { %v534_v9 = vmul.f32 %v2565_v8, %v3157_v11 }
 0x1ab   : > { %v546_v16 = vmul.f32 %v2217_v10, %v534_v9 }
 0x1ac   : > { %v2567_v13 = vpop.eup %2566 }
 0x1ad   : > { %v2569_v14 = vpop.eup %2568  ;;  %v536_v17 = vmul.f32 %v2567_v13, %v3159_v12  ;;  %v558_v23 = vadd.f32 %v2218_v18, %v546_v16 }
 0x1ae   : > { %v535_v15 = vmul.f32 %v2569_v14, %v3165_v19 }
 0x1af   : > { %v548_v26 = vmul.f32 %v2217_v10, %v536_v17 }
 0x1b0   : > { %v547_v21 = vmul.f32 %v2217_v10, %v535_v15  ;;  %v2571_v22 = vpop.eup %2570 }
 0x1b1   : > { %v537_v24 = vmul.f32 %v2571_v22, %v3167_v20  ;;  %v2573_v29 = vpop.eup %2572  ;;  %v560_v30 = vadd.f32 %v2218_v18, %v548_v26  ;;  %v2540_v20 = vld [vmem:[%s3836_s6 + $0x4] ss:$8 sps:$4 sm:$0xff]  }
 0x1b2   : > { %v559_v11 = vadd.f32 %v2218_v18, %v547_v21  ;;  %v538_v31 = vmul.f32 %v2573_v29, %v3173_v25  ;;  %1148 = vmatprep.subr.bf16.mxu1 %v2540_v20  ;;  %v2543_v25 = vld [vmem:[%s3836_s6 + $0x14] ss:$8 sps:$4 sm:$0xff]  }
 0x1b3   : > { %v549_v28 = vmul.f32 %v2217_v10, %v537_v24  ;;  %1149 = vmatpush1.bf16.msra.mxu1 %v2542_v35 }
 0x1b4   : > { %v563_v27 = vpack.c.bf16 %v559_v11, %v558_v23  ;;  %v550_v32 = vmul.f32 %v2217_v10, %v538_v31  ;;  %1150 = vmatprep.subr.bf16.mxu1 %v2543_v25  ;;  %v831_v10 = vrot.slane %v818_v63, 2 }
 0x1b5   : > { %v561_v19 = vadd.f32 %v2218_v18, %v549_v28 }
 0x1b6   : > { %695 = vmatmul.mubr.bf16.vlgmr.msra.gmra.mrb[0].mxu0 %v563_v27  ;;  %v562_v33 = vadd.f32 %v2218_v18, %v550_v32 }
 0x1b7   : > { %704 = vmatprep.mubr.bf16.mxu0 %v2911_v38  ;;  %v564_v12 = vpack.c.bf16 %v561_v19, %v560_v30  ;;  %1151 = vmatpush1.bf16.msra.mxu1 %v2545_v36 }
 0x1b8   : > { %v565_v34 = vpack.c.bf16 %v562_v33, %v562_v33  ;;  %1152 = vmatprep.subr.bf16.mxu1 %v2546_v37 }
 0x1bb   : > { %1153 = vmatpush1.bf16.msra.mxu1 %v2548_v39 }
 0x1bc   : > { %1154 = vmatprep.subr.bf16.mxu1 %v2549_v40 }
 0x1be   : > { %705 = vmatmul.mubr.bf16.gmra.mrb[4].mxu0 %v564_v12 }
 0x1bf   : > { %714 = vmatprep.mubr.bf16.mxu0 %v2911_v38  ;;  %1155 = vmatpush1.bf16.msra.mxu1 %v2551_v41 }
 0x1c0   : > { %1156 = vmatprep.subr.bf16.mxu1 %v2552_v42 }
 0x1c3   : > { %1157 = vmatpush1.bf16.msra.mxu1 %v2554_v43 }
 0x1c4   : > { %1158 = vmatprep.subr.bf16.mxu1 %v2555_v44 }
 0x1c6   : > { %715 = vmatmul.mubr.bf16.gmra.mrb[8].mxu0 %v565_v34 }
 0x1c7   : > { %1159 = vmatpush1.bf16.msra.mxu1 %v2557_v45 }
 0x1c8   : > { %1160 = vmatprep.subr.bf16.mxu1 %v2558_v46 }
 0x1cb   : > { %1161 = vmatpush1.bf16.msra.mxu1 %v2560_v47 }
 0x1cc   : > { %1162 = vmatprep.subr.bf16.mxu1 %v2561_v48 }
 0x1cf   : > { %1163 = vmatpush1.bf16.msra.mxu1 %v2563_v49 }
 0x289   : > { %v696_v1 = vpop.f32.mrb[0].mxu0 }
 0x28a   : > { %v779_v2 = vmul.f32 %v3291_v56, %v696_v1  ;;  %v819_v4 = vmul.f32 %v3298_v58, %v696_v1  ;;  %v698_v5 = vpop.f32.mrb[1].mxu0  ;;  %v763_v6 = vmul.f32 %v3294_v57, %v696_v1  ;;  %v858_v14 = vmul.f32 %v3308_v0, %v696_v1 }
 0x28b   : > { %v700_v8 = vpop.f32.mrb[2].mxu0 }
 0x28c   : > { %v792_v9 = vrot.slane %v779_v2, 1  ;;  %v832_v13 = vrot.slane %v819_v4, 2  ;;  %v702_v15 = vpop.f32.mrb[3].mxu0  ;;  %v780_v16 = vmul.f32 %v3291_v56, %v700_v8  ;;  %v820_v17 = vmul.f32 %v3298_v58, %v700_v8 }
 0x28d   : > { %v859_v18 = vmul.f32 %v3308_v0, %v700_v8  ;;  %v2305_v22 = vpack.c.bf16 %v702_v15, %v698_v5  ;;  %v769_v23 = vadd.f32 %v3303_v62, %v763_v6  ;;  %v869_v28 = vrot.slane %v858_v14, 3 }
 0x28e   : > { %v793_v21 = vsel %vm790_vm0, %v791_v3, %v792_v9  ;;  %v794_v24 = vrot.slane %v780_v16, 1  ;;  %v834_v26 = vrot.slane %v820_v17, 2  ;;  %v833_v27 = vsel %vm830_vm1, %v831_v10, %v832_v13 }
 0x28f   : > { %v808_v11 = vadd.f32 %v793_v21, %v768_v7  ;;  %v764_v29 = vmul.f32 %v3294_v57, %v700_v8  ;;  %v870_v30 = vrot.slane %v859_v18, 3  ;;  %2306 = vst [vmem:[#allocation5] sm:$0xff] %v2305_v22  }
 0x290   : > { %v795_v12 = vsel %vm790_vm0, %v792_v9, %v794_v24  ;;  %v835_v31 = vsel %vm830_vm1, %v832_v13, %v834_v26 }
 0x291   : > { %v848_v19 = vadd.f32 %v833_v27, %v808_v11  ;;  %v706_v32 = vpop.f32.mrb[4].mxu0  ;;  %v809_v33 = vadd.f32 %v795_v12, %v769_v23  ;;  %v871_v34 = vsel %vm868_vm2, %v869_v28, %v870_v30  ;;  %v770_v40 = vadd.f32 %v3303_v62, %v764_v29 }
 0x292   : > { %v781_v20 = vmul.f32 %v3291_v56, %v706_v32  ;;  %v708_v35 = vpop.f32.mrb[5].mxu0  ;;  %v821_v36 = vmul.f32 %v3298_v58, %v706_v32  ;;  %v860_v37 = vmul.f32 %v3308_v0, %v706_v32  ;;  %v765_v42 = vmul.f32 %v3294_v57, %v706_v32 }
 0x293   : > { %v3326_v25 = vadd.f32 %v869_v28, %v848_v19  ;;  %v710_v39 = vpop.f32.mrb[6].mxu0  ;;  %v849_v41 = vadd.f32 %v835_v31, %v809_v33 }
 0x294   : > { %v796_v43 = vrot.slane %v781_v20, 1  ;;  %v712_v44 = vpop.f32.mrb[7].mxu0  ;;  %v836_v46 = vrot.slane %v821_v36, 2  ;;  %v872_v47 = vrot.slane %v860_v37, 3  ;;  %v782_v48 = vmul.f32 %v3291_v56, %v710_v39 }
 0x295   : > { %v2241_v45 = vmul.f32 -1.442695, %v3326_v25  ;;  %v3334_v49 = vadd.f32 %v871_v34, %v849_v41  ;;  %v822_v53 = vmul.f32 %v3298_v58, %v710_v39  ;;  %v861_v4 = vmul.f32 %v3308_v0, %v710_v39 }
 0x296   : > { %v797_v50 = vsel %vm790_vm0, %v794_v24, %v796_v43  ;;  %v837_v61 = vsel %vm830_vm1, %v834_v26, %v836_v46  ;;  %v873_v63 = vsel %vm868_vm2, %v870_v30, %v872_v47  ;;  %v798_v2 = vrot.slane %v782_v48, 1 }
 0x297   : > { %2574 = vpow2.f32 %v2241_v45  ;;  %v810_v60 = vadd.f32 %v797_v50, %v770_v40  ;;  %v2242_v1 = vmul.f32 -1.442695, %v3334_v49  ;;  %v838_v3 = vrot.slane %v822_v53, 2 }
 0x298   : > { %v771_v5 = vadd.f32 %v3303_v62, %v765_v42  ;;  %v766_v7 = vmul.f32 %v3294_v57, %v710_v39  ;;  %v2310_v8 = vpack.c.bf16 %v712_v44, %v708_v35  ;;  %v799_v10 = vsel %vm790_vm0, %v796_v43, %v798_v2 }
 0x299   : > { %v850_v6 = vadd.f32 %v837_v61, %v810_v60  ;;  %v716_v9 = vpop.f32.mrb[8].mxu0  ;;  %2576 = vpow2.f32 %v2242_v1  ;;  %v839_v13 = vsel %vm830_vm1, %v836_v46, %v838_v3  ;;  %v874_v14 = vrot.slane %v861_v4, 3 }
 0x29a   : > { %v718_v15 = vpop.f32.mrb[9].mxu0  ;;  %v811_v17 = vadd.f32 %v799_v10, %v771_v5  ;;  %2328 = vst [vmem:[#allocation5 + $0x8] sm:$0xff] %v2310_v8   ;;  %v767_v18 = vmul.f32 %v3294_v57, %v716_v9  ;;  %v783_v21 = vmul.f32 %v3291_v56, %v716_v9  ;;  %v823_v11 = vmul.f32 %v3298_v58, %v716_v9 }
 0x29b   : > { %v3346_v16 = vadd.f32 %v873_v63, %v850_v6  ;;  %v720_v22 = vpop.f32.mrb[10].mxu0  ;;  %v875_v23 = vsel %vm868_vm2, %v872_v47, %v874_v14  ;;  %v862_v24 = vmul.f32 %v3308_v0, %v716_v9  ;;  %v2294_v26 = vpack.c.bf16 %v718_v15, %v718_v15 }
 0x29c   : > { %v721_v27 = vpop.f32.mrb[11].mxu0  ;;  %v851_v29 = vadd.f32 %v839_v13, %v811_v17  ;;  %v773_v30 = vadd.f32 %v3303_v62, %v767_v18  ;;  %v800_v19 = vrot.slane %v783_v21, 1  ;;  %v772_v12 = vadd.f32 %v3303_v62, %v766_v7 }
 0x29d   : > { %v2243_v28 = vmul.f32 -1.442695, %v3346_v16  ;;  %v840_v57 = vrot.slane %v823_v11, 2  ;;  %v876_v31 = vrot.slane %v862_v24, 3  ;;  %748 = vst [vmem:[#allocation5 + $0x10] sm:$0xf] %v2294_v26 }
 0x29e   : > { %v3356_v56 = vadd.f32 %v875_v23, %v851_v29  ;;  %v801_v58 = vsel %vm790_vm0, %v798_v2, %v800_v19  ;;  %v813_v32 = vadd.f32 %v800_v19, %v773_v30 }
 0x29f   : > { %2578 = vpow2.f32 %v2243_v28  ;;  %v812_v0 = vadd.f32 %v801_v58, %v772_v12  ;;  %v841_v33 = vsel %vm830_vm1, %v838_v3, %v840_v57  ;;  %v877_v34 = vsel %vm868_vm2, %v874_v14, %v876_v31 }
 0x2a0   : > { %v2244_v35 = vmul.f32 -1.442695, %v3356_v56  ;;  %v853_v36 = vadd.f32 %v840_v57, %v813_v32 }
 0x2a1   : > { %v2575_v20 = vpop.eup %2574  ;;  %v852_v62 = vadd.f32 %v841_v33, %v812_v0 }
 0x2a2   : > { %v909_v37 = vadd.f32 1.0, %v2575_v20  ;;  %2580 = vpow2.f32 %v2244_v35  ;;  %v3362_v39 = vadd.f32 %v876_v31, %v853_v36 }
 0x2a3   : > { %v2577_v40 = vpop.eup %2576  ;;  %v3364_v41 = vadd.f32 %v877_v34, %v852_v62 }
 0x2a4   : > { %2582 = vrcp.f32 %v909_v37  ;;  %v910_v42 = vadd.f32 1.0, %v2577_v40  ;;  %v2246_v43 = vmul.f32 -1.442695, %v3362_v39 }
 0x2a5   : > { %v2245_v44 = vmul.f32 -1.442695, %v3364_v41 }
 0x2a6   : > { %2584 = vrcp.f32 %v910_v42 }
 0x2a7   : > { %2586 = vpow2.f32 %v2245_v44 }
 0x2a8   : > { %2588 = vpow2.f32 %v2246_v43 }
 0x2a9   : > { %v2579_v45 = vpop.eup %2578 }
 0x2aa   : > { %v911_v46 = vadd.f32 1.0, %v2579_v45 }
 0x2ac   : > { %2590 = vrcp.f32 %v911_v46  ;;  %v2581_v47 = vpop.eup %2580 }
 0x2ad   : > { %v912_v50 = vadd.f32 1.0, %v2581_v47 }
 0x2ae   : > { %v2583_v48 = vpop.eup %2582 }
 0x2af   : > { %v927_v53 = vmul.f32 %v2583_v48, %v3326_v25  ;;  %2592 = vrcp.f32 %v912_v50 }
 0x2b0   : > { %v2585_v60 = vpop.eup %2584 }
 0x2b1   : > { %v2295_v61 = vpack.c.bf16 %v927_v53, %v927_v53  ;;  %v2587_v63 = vpop.eup %2586  ;;  %v928_v1 = vmul.f32 %v2585_v60, %v3334_v49  ;;  %v1318_v14 = vrot.slane %v927_v53, 5 }
 0x2b2   : > { %v2589_v2 = vpop.eup %2588  ;;  %v913_v5 = vadd.f32 1.0, %v2587_v63 }
 0x2b3   : > { %v955_v3 = vshrl.u32 %v2295_v61, 16  ;;  %v958_v4 = vshll.u32 %v2295_v61, 16  ;;  %v2296_v6 = vpack.c.bf16 %v928_v1, %v928_v1  ;;  %v914_v7 = vadd.f32 1.0, %v2589_v2 }
 0x2b4   : > { %v933_v8 = vpack.c.bf16 %v928_v1, %v927_v53  ;;  %v1319_v9 = vrot.slane %v928_v1, 5  ;;  %2594 = vrcp.f32 %v913_v5 }
 0x2b5   : > { %v957_v10 = vrot.slane %v955_v3, 6  ;;  %v960_v13 = vrot.slane %v958_v4, 7  ;;  %v964_v15 = vshrl.u32 %v2296_v6, 16  ;;  %v967_v17 = vshll.u32 %v2296_v6, 16 }
 0x2b6   : > { %v2591_v25 = vpop.eup %2590  ;;  %2596 = vrcp.f32 %v914_v7  ;;  %v3372_v21 = vsel %vm1317_vm3, %v1318_v14, %v1319_v9  ;;  %v1040_v30 = vshrl.u32 %v933_v8, 16  ;;  %v1043_v19 = vshll.u32 %v933_v8, 16 }
 0x2b7   : > { %v961_v49 = vor.u32 %v960_v13, %v957_v10  ;;  %v929_v18 = vmul.f32 %v2591_v25, %v3346_v16  ;;  %v966_v22 = vrot.slane %v964_v15, 6  ;;  %v969_v23 = vrot.slane %v967_v17, 7 }
 0x2b8   : > { %v1042_v35 = vrot.slane %v1040_v30, 2  ;;  %v1045_v36 = vrot.slane %v1043_v19, 3 }
 0x2b9   : > { %v962_v11 = vrot.slane %v961_v49, 4  ;;  %v2297_v26 = vpack.c.bf16 %v929_v18, %v929_v18  ;;  %v1321_v27 = vrot.slane %v929_v18, 5  ;;  %v2593_v28 = vpop.eup %2592  ;;  %v970_v29 = vor.u32 %v969_v23, %v966_v22 }
 0x2ba   : > { %v930_v16 = vmul.f32 %v2593_v28, %v3356_v56  ;;  %v1046_v4 = vor.u32 %v1045_v36, %v1042_v35 }
 0x2bb   : > { %v974_v12 = vshrl.u32 %v2297_v26, 16  ;;  %v977_v57 = vshll.u32 %v2297_v26, 16  ;;  %v971_v31 = vsel %vm3375_vm6, %v962_v11, %v970_v29  ;;  %v3383_v58 = vsel %vm1317_vm3, %v1319_v9, %v1321_v27 }
 0x2bc   : > { %1017 = vst [vmem:[#allocation4] sm:$0xf] %v971_v31  ;;  %v2298_v33 = vpack.c.bf16 %v930_v16, %v930_v16  ;;  %v934_v34 = vpack.c.bf16 %v930_v16, %v929_v18  ;;  %v972_v20 = vrot.slane %v970_v29, 4  ;;  %v1323_v37 = vrot.slane %v930_v16, 5 }
 0x2bd   : > { %v976_v32 = vrot.slane %v974_v12, 6  ;;  %v979_v0 = vrot.slane %v977_v57, 7 }
 0x2be   : > { %v2595_v62 = vpop.eup %2594  ;;  %v984_v42 = vshrl.u32 %v2298_v33, 16  ;;  %v987_v43 = vshll.u32 %v2298_v33, 16  ;;  %v1048_v56 = vshrl.u32 %v934_v34, 16  ;;  %v1051_v46 = vshll.u32 %v934_v34, 16 }
 0x2bf   : > { %v980_v40 = vor.u32 %v979_v0, %v976_v32  ;;  %v931_v45 = vmul.f32 %v2595_v62, %v3364_v41  ;;  %v3387_v47 = vsel %vm1317_vm3, %v1321_v27, %v1323_v37  ;;  %v2269_v0 = vld [vmem:[%s3837_s7] ss:$0 sm:$0xff] }
 0x2c0   : > { %v2597_v44 = vpop.eup %2596  ;;  %v986_v53 = vrot.slane %v984_v42, 6  ;;  %v989_v60 = vrot.slane %v987_v43, 7  ;;  %v1050_v1 = vrot.slane %v1048_v56, 2  ;;  %v1053_v2 = vrot.slane %v1051_v46, 3 }
 0x2c1   : > { %v981_v48 = vsel %vm3375_vm6, %v972_v20, %v980_v40  ;;  %v982_v50 = vrot.slane %v980_v40, 4  ;;  %v932_v61 = vmul.f32 %v2597_v44, %v3362_v39  ;;  %v2299_v63 = vpack.c.bf16 %v931_v45, %v931_v45 }
 0x2c2   : > { %1018 = vst [vmem:[#allocation4 + $0x4] sm:$0xf] %v981_v48  ;;  %v990_v3 = vor.u32 %v989_v60, %v986_v53  ;;  %v1325_v41 = vrot.slane %v931_v45, 5  ;;  %v1054_v13 = vor.u32 %v1053_v2, %v1050_v1 }
 0x2c3   : > { %v2300_v5 = vpack.c.bf16 %v932_v61, %v932_v61  ;;  %v994_v6 = vshrl.u32 %v2299_v63, 16  ;;  %v997_v7 = vshll.u32 %v2299_v63, 16  ;;  %v1327_v8 = vrot.slane %v932_v61, 5 }
 0x2c4   : > { %v991_v9 = vsel %vm3375_vm6, %v982_v50, %v990_v3  ;;  %v992_v10 = vrot.slane %v990_v3, 4  ;;  %v935_v14 = vpack.c.bf16 %v932_v61, %v931_v45  ;;  %v1055_v49 = vsel %vm1038_vm7, %v1046_v4, %v1054_v13 }
 0x2c5   : > { %1019 = vst [vmem:[#allocation4 + $0x8] sm:$0xf] %v991_v9  ;;  %v996_v25 = vrot.slane %v994_v6, 6  ;;  %v999_v39 = vrot.slane %v997_v7, 7  ;;  %v1004_v15 = vshrl.u32 %v2300_v5, 16  ;;  %v1007_v17 = vshll.u32 %v2300_v5, 16  ;;  %1181 = vmatmul.mubr.bf16.vlgmr.msra.gmra.mrb[0].mxu1 %v1055_v49 }
 0x2c6   : > { %v1057_v18 = vshrl.u32 %v935_v14, 16  ;;  %v1060_v22 = vshll.u32 %v935_v14, 16  ;;  %v3396_v23 = vsel %vm1317_vm3, %v1323_v37, %v1325_v41  ;;  %v3399_v28 = vsel %vm1317_vm3, %v1325_v41, %v1327_v8  ;;  %1190 = vmatprep.mubr.bf16.mxu1 %v2911_v38 }
 0x2c7   : > { %v1000_v11 = vor.u32 %v999_v39, %v996_v25  ;;  %v1006_v26 = vrot.slane %v1004_v15, 6  ;;  %v1009_v27 = vrot.slane %v1007_v17, 7 }
 0x2c8   : > { %v1059_v29 = vrot.slane %v1057_v18, 2  ;;  %v1062_v30 = vrot.slane %v1060_v22, 3 }
 0x2c9   : > { %v1001_v19 = vsel %vm3375_vm6, %v992_v10, %v1000_v11  ;;  %v1002_v12 = vrot.slane %v1000_v11, 4  ;;  %v1010_v57 = vor.u32 %v1009_v27, %v1006_v26 }
 0x2ca   : > { %1020 = vst [vmem:[#allocation4 + $0xc] sm:$0xf] %v1001_v19  ;;  %v1063_v16 = vor.u32 %v1062_v30, %v1059_v29 }
 0x2cb   : > { %v1011_v31 = vsel %vm3375_vm6, %v1002_v12, %v1010_v57 }
 0x2cc   : > { %1021 = vst [vmem:[#allocation4 + $0x10] sm:$0xf] %v1011_v31  ;;  %v1064_v32 = vsel %vm1038_vm7, %v1054_v13, %v1063_v16 }
 0x2cd   : > { %1191 = vmatmul.mubr.bf16.gmra.mrb[4].mxu1 %v1064_v32 }
 0x2ce   : > { %1200 = vmatprep.mubr.bf16.mxu1 %v2911_v38 }
 0x2d5   : > { %1201 = vmatmul.mubr.bf16.gmra.mrb[8].mxu1 %v1063_v16 }
 0x398   : > { %v1182_v33 = vpop.f32.mrb[0].mxu1 }
 0x399   : > { %v3411_v34 = vadd.f32 %v2269_v0, %v1182_v33  ;;  %v1184_v20 = vpop.f32.mrb[1].mxu1 }
 0x39a   : > { %1346 = vst.msk [vmem:[#allocation3 + $0x8] sm:$0xff] %vm1345_vm8, %v1184_v20  ;;  %v1186_v24 = vpop.f32.mrb[2].mxu1 }
 0x39b   : > { %v1236_v35 = vand.u32 2147483647, %v3411_v34  ;;  %v3415_v36 = vadd.f32 %v2269_v0, %v1186_v24  ;;  %v1188_v37 = vpop.f32.mrb[3].mxu1  ;;  %v1221_v31 = vmax.f32 %v3411_v34, 0.0  ;;  %vm1226_vm11 = vcmp.ne.f32.partialorder %v3411_v34, %v3411_v34 }
 0x39c   : > { %1348 = vst.msk [vmem:[#allocation3 + $0x18] sm:$0xff] %vm1345_vm8, %v1188_v37 }
 0x39d   : > { %v1241_v38 = vsub.f32 0.0, %v1236_v35  ;;  %v1237_v62 = vand.u32 2147483647, %v3415_v36  ;;  %v1222_v33 = vmax.f32 %v3415_v36, 0.0  ;;  %vm1227_vm12 = vcmp.ne.f32.partialorder %v3415_v36, %v3415_v36 }
 0x39f   : > { %v1246_v40 = vmul.f32 1.442695, %v1241_v38  ;;  %v1242_v42 = vsub.f32 0.0, %v1237_v62 }
 0x3a0   : > { %v1192_v43 = vpop.f32.mrb[4].mxu1 }
 0x3a1   : > { %2598 = vpow2.f32 %v1246_v40  ;;  %v1248_v56 = vmul.f32 1.442695, %v1242_v42  ;;  %v3419_v44 = vadd.f32 %v2269_v0, %v1192_v43  ;;  %v1194_v45 = vpop.f32.mrb[5].mxu1 }
 0x3a2   : > { %1350 = vst.msk [vmem:[#allocation3 + $0x28] sm:$0xff] %vm1345_vm8, %v1194_v45  ;;  %v1196_v46 = vpop.f32.mrb[6].mxu1 }
 0x3a3   : > { %2600 = vpow2.f32 %v1248_v56  ;;  %v1238_v48 = vand.u32 2147483647, %v3419_v44  ;;  %v1198_v50 = vpop.f32.mrb[7].mxu1  ;;  %v3423_v53 = vadd.f32 %v2269_v0, %v1196_v46  ;;  %vm1228_vm14 = vcmp.ne.f32.partialorder %v3419_v44, %v3419_v44 }
 0x3a4   : > { %1352 = vst.msk [vmem:[#allocation3 + $0x38] sm:$0xff] %vm1345_vm8, %v1198_v50 }
 0x3a5   : > { %v1243_v60 = vsub.f32 0.0, %v1238_v48  ;;  %v1239_v61 = vand.u32 2147483647, %v3423_v53  ;;  %vm1229_vm4 = vcmp.ne.f32.partialorder %v3423_v53, %v3423_v53 }
 0x3a7   : > { %v1250_v63 = vmul.f32 1.442695, %v1243_v60  ;;  %v1244_v1 = vsub.f32 0.0, %v1239_v61 }
 0x3a8   : > { %v1202_v2 = vpop.f32.mrb[8].mxu1 }
 0x3a9   : > { %2602 = vpow2.f32 %v1250_v63  ;;  %v3427_v3 = vadd.f32 %v2269_v0, %v1202_v2  ;;  %v1204_v4 = vpop.f32.mrb[9].mxu1  ;;  %v1252_v41 = vmul.f32 1.442695, %v1244_v1  ;;  %v1223_v2 = vmax.f32 %v3419_v44, 0.0 }
 0x3aa   : > { %1354 = vst.msk [vmem:[#allocation3 + $0x48] sm:$0xff] %vm1345_vm8, %v1204_v4  ;;  %v1206_v5 = vpop.f32.mrb[10].mxu1 }
 0x3ab   : > { %v2599_v6 = vpop.eup %2598  ;;  %v1240_v7 = vand.u32 2147483647, %v3427_v3  ;;  %v1207_v8 = vpop.f32.mrb[11].mxu1  ;;  %2604 = vpow2.f32 %v1252_v41  ;;  %vm1230_vm6 = vcmp.ne.f32.partialorder %v3427_v3, %v3427_v3 }
 0x3ac   : > { %v1256_v9 = vadd.f32 1.0, %v2599_v6  ;;  %v1259_v39 = vmul.f32 -0.5, %v2599_v6  ;;  %v1262_v11 = vand.u32 2147483647, %v2599_v6 }
 0x3ad   : > { %v2601_v10 = vpop.eup %2600  ;;  %v1245_v13 = vsub.f32 0.0, %v1240_v7 }
 0x3ae   : > { %2606 = vlog2.f32 %v1256_v9  ;;  %v1265_v14 = vadd.f32 1.0, %v2601_v10  ;;  %v1268_v17 = vmul.f32 -0.5, %v2601_v10  ;;  %v1260_v18 = vadd.f32 1.0, %v1259_v39 }
 0x3af   : > { %v1254_v25 = vmul.f32 1.442695, %v1245_v13  ;;  %v1271_v30 = vand.u32 2147483647, %v2601_v10  ;;  %vm1263_vm9 = vcmp.lt.f32.partialorder %v1262_v11, 0.0004427343 }
 0x3b0   : > { %2608 = vlog2.f32 %v1265_v14  ;;  %v1269_v26 = vadd.f32 1.0, %v1268_v17  ;;  %v1261_v12 = vmul.f32 %v2599_v6, %v1260_v18 }
 0x3b1   : > { %2610 = vpow2.f32 %v1254_v25  ;;  %vm1272_vm10 = vcmp.lt.f32.partialorder %v1271_v30, 0.0004427343 }
 0x3b2   : > { %v1270_v24 = vmul.f32 %v2601_v10, %v1269_v26 }
 0x3b3   : > { %v2603_v15 = vpop.eup %2602 }
 0x3b4   : > { %v1274_v49 = vadd.f32 1.0, %v2603_v15  ;;  %v1277_v57 = vmul.f32 -0.5, %v2603_v15  ;;  %v1280_v56 = vand.u32 2147483647, %v2603_v15 }
 0x3b5   : > { %v2605_v22 = vpop.eup %2604 }
 0x3b6   : > { %2612 = vlog2.f32 %v1274_v49  ;;  %v1283_v27 = vadd.f32 1.0, %v2605_v22  ;;  %v1286_v37 = vmul.f32 -0.5, %v2605_v22  ;;  %v1278_v40 = vadd.f32 1.0, %v1277_v57 }
 0x3b7   : > { %v1289_v60 = vand.u32 2147483647, %v2605_v22  ;;  %vm1281_vm13 = vcmp.lt.f32.partialorder %v1280_v56, 0.0004427343 }
 0x3b8   : > { %v2607_v29 = vpop.eup %2606  ;;  %2614 = vlog2.f32 %v1283_v27  ;;  %v1287_v50 = vadd.f32 1.0, %v1286_v37 }
 0x3b9   : > { %v1258_v19 = vmul.f32 0.6931472, %v2607_v29  ;;  %vm1290_vm15 = vcmp.lt.f32.partialorder %v1289_v60, 0.0004427343 }
 0x3ba   : > { %v2609_v16 = vpop.eup %2608  ;;  %v1288_v6 = vmul.f32 %v2605_v22, %v1287_v50 }
 0x3bb   : > { %v2611_v32 = vpop.eup %2610  ;;  %v1264_v0 = vsel %vm1263_vm9, %v1261_v12, %v1258_v19  ;;  %v1267_v20 = vmul.f32 0.6931472, %v2609_v16 }
 0x3bc   : > { %v1301_v35 = vadd.f32 %v1264_v0, %v1221_v31  ;;  %v1292_v38 = vadd.f32 1.0, %v2611_v32  ;;  %v1295_v1 = vmul.f32 -0.5, %v2611_v32  ;;  %v1298_v9 = vand.u32 2147483647, %v2611_v32 }
 0x3bd   : > { %v1273_v62 = vsel %vm1272_vm10, %v1270_v24, %v1267_v20 }
 0x3be   : > { %v1306_v42 = vsel %vm1226_vm11, %v3411_v34, %v1301_v35  ;;  %v1302_v43 = vadd.f32 %v1273_v62, %v1222_v33  ;;  %2616 = vlog2.f32 %v1292_v38  ;;  %v1279_v34 = vmul.f32 %v2603_v15, %v1278_v40 }
 0x3bf   : > { %v1334_v45 = vmul.f32 %v3372_v21, %v1306_v42  ;;  %1344 = vst [vmem:[#allocation3] sm:$0xff] %v1306_v42  ;;  %vm1299_vm5 = vcmp.lt.f32.partialorder %v1298_v9, 0.0004427343 }
 0x3c0   : > { %v2613_v46 = vpop.eup %2612  ;;  %v1307_v48 = vsel %vm1227_vm12, %v3415_v36, %v1302_v43  ;;  %v1224_v36 = vmax.f32 %v3423_v53, 0.0 }
 0x3c1   : > { %1339 = vst [vmem:[#allocation2] sm:$0xff] %v1334_v45  ;;  %v1335_v61 = vmul.f32 %v3383_v58, %v1307_v48  ;;  %1347 = vst [vmem:[#allocation3 + $0x10] sm:$0xff] %v1307_v48  ;;  %v1276_v63 = vmul.f32 0.6931472, %v2613_v46  ;;  %v1296_v58 = vadd.f32 1.0, %v1295_v1 }
 0x3c2   : > { %v2615_v21 = vpop.eup %2614 }
 0x3c3   : > { %1340 = vst [vmem:[#allocation2 + $0x8] sm:$0xff] %v1335_v61  ;;  %v1282_v4 = vsel %vm1281_vm13, %v1279_v34, %v1276_v63  ;;  %v1285_v5 = vmul.f32 0.6931472, %v2615_v21  ;;  %v1297_v15 = vmul.f32 %v2611_v32, %v1296_v58 }
 0x3c4   : > { %v1303_v41 = vadd.f32 %v1282_v4, %v1223_v2 }
 0x3c5   : > { %v1291_v8 = vsel %vm1290_vm15, %v1288_v6, %v1285_v5 }
 0x3c6   : > { %v1308_v7 = vsel %vm1228_vm14, %v3419_v44, %v1303_v41  ;;  %v1304_v13 = vadd.f32 %v1291_v8, %v1224_v36  ;;  %v1225_v44 = vmax.f32 %v3427_v3, 0.0 }
 0x3c7   : > { %v1336_v10 = vmul.f32 %v3387_v47, %v1308_v7  ;;  %1349 = vst [vmem:[#allocation3 + $0x20] sm:$0xff] %v1308_v7 }
 0x3c8   : > { %v2617_v14 = vpop.eup %2616  ;;  %v1309_v25 = vsel %vm1229_vm4, %v3423_v53, %v1304_v13  ;;  %v3459_v53 = vmov 0.0  }
 0x3c9   : > { %1341 = vst [vmem:[#allocation2 + $0x10] sm:$0xff] %v1336_v10  ;;  %v1294_v39 = vmul.f32 0.6931472, %v2617_v14  ;;  %v1337_v17 = vmul.f32 %v3396_v23, %v1309_v25  ;;  %1351 = vst [vmem:[#allocation3 + $0x30] sm:$0xff] %v1309_v25  ;;  %v3461_v23 = vmov 0.0  }
 0x3cb   : > { %v1300_v49 = vsel %vm1299_vm5, %v1297_v15, %v1294_v39  ;;  %1342 = vst [vmem:[#allocation2 + $0x18] sm:$0xff] %v1337_v17 }
 0x3cc   : > { %v1305_v47 = vadd.f32 %v1300_v49, %v1225_v44 }
 0x3ce   : > { %v1310_v18 = vsel %vm1230_vm6, %v3427_v3, %v1305_v47 }
 0x3cf   : > { %v1338_v22 = vmul.f32 %v3399_v28, %v1310_v18  ;;  %1353 = vst [vmem:[#allocation3 + $0x40] sm:$0xff] %v1310_v18 }
 0x3d1   : > { %1343 = vst [vmem:[#allocation2 + $0x20] sm:$0xff] %v1338_v22 }
 0x3d2 LB: >> { %v2912_v28 = vmov 1   ;;  %s2270_s15 = sshll.u32 %s2904_s29, 3  ;;  %v2913_v11 = vmov 0   ;;  %v2914_v29 = vmov 2   ;;  %v2915_v19 = vmov 3   ;;  %v3520_v42 = vld [vmem:[%s3838_s8] sm:$0xff]  ;;  %s2904_s29 = sphi %s3463_s29, %s1362_s29   ;;  %v2900_v23 = vphi %v3461_v23, %v3869_v23   ;;  %v2896_v53 = vphi %v3459_v53, %v3677_v53  }
 0x3d3   : >> { %2619 = vset.pattern.permute.xlu1 %v2912_v28  ;;  %s1368_s30 = sshra.s32 %s2270_s15, 3  ;;  %v2916_v12 = vmov 6   ;;  %v2917_v57 = vmov 4   ;;  %v2918_v31 = vmov 5   ;;  %v2919_v32 = vmov 7   ;;  %s3551_s28 = scalar_lea.vmem [#allocation2], %s2270_s15 }
 0x3d4   : >> { %s2301_s5 = sshll.u32 %s1368_s30, 4  ;;  %v2920_v0 = vmov 1966171168   ;;  %vm1831_vm7 = vcmask 1040384   ;;  %vm1833_vm8 = vcmask 1041408   ;;  %vm1836_vm9 = vcmask 1043456  }
 0x3d5   : >> { %s3478_s16 = scalar_lea.vmem [#allocation3], %s2301_s5  ;;  %v1412_v33 = vunpack.c.l.s4 %v2920_v0  ;;  %s1362_s29 = sadd.s32 1, %s2904_s29  }
 0x3d6   : >> { %v1374_v3 = vld [vmem:[%s3478_s16 + $0x8] sm:$0xff]  ;;  %v1373_v35 = vld [vmem:[%s3478_s16] sm:$0xff]  ;;  %p1359_p13 = scmp.ge.s32.totalorder %s1362_s29, 5  }
 0x3d7   : >> { %1377 = vxpose.xlu0.b32.start.end [1/1] (short) (narrow) %v1374_v3, 32  ;;  %v1413_v20 = vunpack.c.0.s8 %v1412_v33  ;;  %v1410_v45 = vcombine.high %v1373_v35, %v1373_v35  ;;  %vm2922_vm10 = vmmov (%p1359_p13), 0   ;;  %s2388_s26 = smul.u32 (%p1359_p13), 640, %s2884_s20  ;;  %s2080_s29 = sshll.u32 (%p1359_p13), %s3457_s17, 4  ;;  %s3779_s29 = int_to_ptr.vmem [resolvable:$true] %s2080_s29 }
 0x3d8   : >> { %v3554_v7 = vld [vmem:[%s3551_s28] sm:$0xff]  ;;  %s3784_s20 = scalar_lea.sflag (%p1359_p13), [#allocation10], %s442_s13  ;;  %p3870_p8 = scmp.ne.s32.totalorder (%p1359_p13), %s3856_s27, 0 }
 0x3d9   : >> { %v1416_v24 = vsub.s32 %v1413_v20, %v3282_v51  ;;  %v3564_v25 = vrot.slane %v3554_v7, %v776_v52  ;;  %v3568_v39 = vrot.slane %v3554_v7, %v3286_v54  ;;  %v3602_v0 = vrot.slane %v3554_v7, %v856_v59  ;;  %v3717_v52 = vld [vmem:[#allocation5 + $0x8] sm:$0xff] (%p1359_p13)   ;;  %s3777_s5 = scalar_lea.hbm (%p1359_p13), %s3841_s11, %s2388_s26  ;;  %s2923_s16 = smov (%p1359_p13), [#allocation14]  }
 0x3da   : > { %v2327_v59 = vunpack.c.h.bf16 (%p1359_p13), %v3717_v52  ;;  %s2798_s12 = sshll.u32 (%p1359_p13), %s2923_s16, 4  ;;  %s2799_s12 = int_to_ptr.vmem [resolvable:$false] %s2798_s12 }
 0x3db   : >> { %v1417_v37 = vrot.slane %v1373_v35, %v1416_v24  ;;  %v1424_v60 = vrot.slane %v1410_v45, %v1416_v24  ;;  %s2800_s14 = scalar_lea.vmem (%p1359_p13), %s2799_s12, 1280  ;;  %p2801_p3 = scmp.lt.s32.totalorder (%p1359_p13), %s3779_s29, %s2799_s12 }
 0x3dd   : >> { %v1433_v38 = vrot.slane %v1417_v37, %v1416_v24  ;;  %v1425_v62 = vcombine.high %v1417_v37, %v1417_v37  ;;  %v1426_v1 = vcombine.high %v1424_v60, %v1424_v60  ;;  %v1440_v2 = vrot.slane %v1424_v60, %v1416_v24 }
 0x3df   : >> { %v3515_v40 = vrot.slane %v1433_v38, %v3286_v54  ;;  %v1447_v43 = vrot.slane %v1425_v62, %v1416_v24  ;;  %v1455_v46 = vcombine.high %v1433_v38, %v1433_v38  ;;  %v1454_v5 = vrot.slane %v1426_v1, %v1416_v24 }
 0x3e0   : >> { %v3543_v6 = vrot.slane %v1440_v2, %v3286_v54  ;;  %v1456_v8 = vcombine.high %v1440_v2, %v1440_v2  ;;  %v1693_v24 = vsub.s32 4, %v3282_v51 }
 0x3e1   : >> { %v1499_v56 = vmul.f32 %v3515_v40, %v3520_v42  ;;  %v3527_v48 = vrot.slane %v1447_v43, %v3286_v54  ;;  %v1457_v61 = vcombine.high %v1447_v43, %v1447_v43  ;;  %v3531_v63 = vrot.slane %v1455_v46, %v3286_v54 }
 0x3e2   : >> { %v3557_v9 = vrot.slane %v1454_v5, %v3286_v54  ;;  %v1507_v13 = vmul.f32 %v3543_v6, %v3520_v42  ;;  %v3572_v17 = vrot.slane %v1456_v8, %v3286_v54  ;;  %v1458_v22 = vcombine.high %v1454_v5, %v1454_v5 }
 0x3e3   : >> { %v1515_v50 = vmul.f32 1.442695, %v1499_v56  ;;  %v1501_v34 = vmul.f32 %v3527_v48, %v3520_v42  ;;  %v3537_v21 = vrot.slane %v1457_v61, %v3286_v54  ;;  %v1503_v4 = vmul.f32 %v3531_v63, %v3520_v42 }
 0x3e4   : >> { %v1509_v44 = vmul.f32 %v3557_v9, %v3520_v42  ;;  %v1531_v49 = vmul.f32 1.442695, %v1507_v13  ;;  %v1763_v13 = vsub.s32 6, %v3282_v51 }
 0x3e5   : >> { %2650 = vpow2.f32 %v1515_v50  ;;  %v1519_v41 = vmul.f32 1.442695, %v1501_v34  ;;  %v1505_v36 = vmul.f32 %v3537_v21, %v3520_v42  ;;  %v1523_v58 = vmul.f32 1.442695, %v1503_v4 }
 0x3e7   : >> { %2652 = vpow2.f32 %v1519_v41  ;;  %v1527_v14 = vmul.f32 1.442695, %v1505_v36 }
 0x3e8   : >> { %2654 = vpow2.f32 %v1523_v58 }
 0x3e9   : >> { %2656 = vpow2.f32 %v1527_v14 }
 0x3ea   : >> { %2658 = vpow2.f32 %v1531_v49 }
 0x3ef   : >> { %v2651_v10 = vpop.eup %2650 }
 0x3f0   : >> { %v1563_v15 = vmul.f32 %v2900_v23, %v2651_v10  ;;  %v3581_v23 = vrot.slane %v3554_v7, %v816_v55  ;;  %v2326_v55 = vunpack.c.l.bf16 (%p1359_p13), %v3717_v52 }
 0x400   : >> { %2618 = vset.pattern.permute.xlu0 %v2913_v11 }
 0x457   : >> { %v1393_v26 = vpop.trf.xlu0 }
 0x458   : >> { %1591 = vperm.xlu1 %2619, %v1393_v26   ;;  %1553 = vperm.xlu0 %2618, %v1393_v26  }
 0x45b   : >> { %v1394_v27 = vpop.trf.xlu0 }
 0x45c   : >> { %2620 = vset.pattern.permute.xlu1 %v2914_v29  ;;  %2634 = vset.pattern.permute.xlu0 %v2912_v28 }
 0x45d   : >> { %1626 = vperm.xlu1 %2620, %v1393_v26  }
 0x45f   : >> { %v3483_v30 = vpop.trf.xlu0 }
 0x460   : >> { %1605 = vperm.xlu0 %2634, %v3483_v30  }
 0x461   : >> { %2621 = vset.pattern.permute.xlu1 %v2915_v19 }
 0x462   : >> { %1661 = vperm.xlu1 %2621, %v1393_v26  }
 0x463   : >> { %v3489_v16 = vpop.trf.xlu0 }
 0x464   : >> { %2639 = vset.pattern.permute.xlu0 %v2916_v12 }
 0x465   : >> { %1780 = vperm.xlu0 %2639, %v3483_v30  }
 0x466   : >> { %2622 = vset.pattern.permute.xlu1 %v2917_v57 }
 0x467   : >> { %1696 = vperm.xlu1 %2622, %v1393_v26  }
 0x469   : >> { %2642 = vset.pattern.permute.xlu0 %v2914_v29 }
 0x46a   : >> { %1644 = vperm.xlu0 %2642, %v3489_v16  }
 0x46b   : >> { %2623 = vset.pattern.permute.xlu1 %v2918_v31 }
 0x46c   : >> { %1731 = vperm.xlu1 %2623, %v1393_v26  }
 0x46e   : >> { %2644 = vset.pattern.permute.xlu0 %v2917_v57 }
 0x46f   : >> { %1714 = vperm.xlu0 %2644, %v3489_v16  }
 0x470   : >> { %2624 = vset.pattern.permute.xlu1 %v2916_v12 }
 0x471   : >> { %1766 = vperm.xlu1 %2624, %v1393_v26  }
 0x473   : >> { %2645 = vset.pattern.permute.xlu0 %v2919_v32 }
 0x474   : >> { %1801 = vperm.xlu0 %2645, %v1393_v26  }
 0x475   : >> { %2625 = vset.pattern.permute.xlu1 %v2913_v11 }
 0x476   : >> { %1558 = vperm.xlu1 %2625, %v1394_v27  }
 0x478   : >> { %1819 = vperm.xlu0 %2645, %v3489_v16  }
 0x47a   : >> { %2626 = vset.pattern.permute.xlu1 %v2912_v28 }
 0x47b   : >> { %1595 = vperm.xlu1 %2626, %v1394_v27  }
 0x47f   : >> { %2627 = vset.pattern.permute.xlu1 %v2914_v29 }
 0x480   : >> { %1630 = vperm.xlu1 %2627, %v1394_v27  }
 0x484   : >> { %2628 = vset.pattern.permute.xlu1 %v2915_v19 }
 0x485   : >> { %1665 = vperm.xlu1 %2628, %v1394_v27  }
 0x489   : >> { %2629 = vset.pattern.permute.xlu1 %v2917_v57 }
 0x48a   : >> { %1700 = vperm.xlu1 %2629, %v1394_v27  }
 0x48e   : >> { %2630 = vset.pattern.permute.xlu1 %v2918_v31 }
 0x48f   : >> { %1735 = vperm.xlu1 %2630, %v1394_v27  }
 0x493   : >> { %2631 = vset.pattern.permute.xlu1 %v2916_v12 }
 0x494   : >> { %1770 = vperm.xlu1 %2631, %v1394_v27  }
 0x498   : >> { %2632 = vset.pattern.permute.xlu1 %v2919_v32 }
 0x499   : >> { %1805 = vperm.xlu1 %2632, %v1394_v27   ;;  %v1511_v27 = vmul.f32 %v3572_v17, %v3520_v42 }
 0x49b   : >> { %v1539_v20 = vmul.f32 1.442695, %v1511_v27 }
 0x49d   : >> { %2633 = vset.pattern.permute.xlu1 %v2913_v11 }
 0x49e   : >> { %1569 = vperm.xlu1 %2633, %v3483_v30  }
 0x4a2   : >> { %2635 = vset.pattern.permute.xlu1 %v2914_v29  ;;  %v1535_v29 = vmul.f32 1.442695, %v1509_v44 }
 0x4a3   : >> { %1640 = vperm.xlu1 %2635, %v3483_v30  }
 0x4a4   : >> { %2660 = vpow2.f32 %v1535_v29 }
 0x4a5   : >> { %2662 = vpow2.f32 %v1539_v20 }
 0x4a7   : >> { %2636 = vset.pattern.permute.xlu1 %v2915_v19 }
 0x4a8   : >> { %1675 = vperm.xlu1 %2636, %v3483_v30  }
 0x4ac   : >> { %2637 = vset.pattern.permute.xlu1 %v2917_v57 }
 0x4ad   : >> { %1710 = vperm.xlu1 %2637, %v3483_v30  }
 0x4b1   : >> { %2638 = vset.pattern.permute.xlu1 %v2918_v31 }
 0x4b2   : >> { %1745 = vperm.xlu1 %2638, %v3483_v30  }
 0x4b6   : >> { %2640 = vset.pattern.permute.xlu1 %v2913_v11  ;;  %v2653_v11 = vpop.eup %2652 }
 0x4b7   : >> { %1574 = vperm.xlu1 %2640, %v3489_v16  }
 0x4bb   : >> { %2641 = vset.pattern.permute.xlu1 %v2912_v28 }
 0x4bc   : >> { %1609 = vperm.xlu1 %2641, %v3489_v16  }
 0x4c0   : >> { %2643 = vset.pattern.permute.xlu1 %v2915_v19  ;;  %v3593_v19 = vrot.slane %v1458_v22, %v3286_v54  ;;  %v3642_v22 = vrot.slane %v3554_v7, %v1763_v13  ;;  %v2685_v54 = vld [vmem:[#allocation13 + $0x18] sm:$0xff] (%p1359_p13)  }
 0x4c1   : >> { %1679 = vperm.xlu1 %2643, %v3489_v16  }
 0x4c2   : >> { %v1513_v35 = vmul.f32 %v3593_v19, %v3520_v42  ;;  %v1728_v42 = vsub.s32 5, %v3282_v51 }
 0x4c4   : >> { %v1543_v50 = vmul.f32 1.442695, %v1513_v35  ;;  %v3629_v36 = vrot.slane %v3554_v7, %v1728_v42 }
 0x4c5   : >> { %2646 = vset.pattern.permute.xlu1 %v2918_v31 }
 0x4c6   : >> { %1749 = vperm.xlu1 %2646, %v3489_v16  }
 0x4ca   : >> { %2647 = vset.pattern.permute.xlu1 %v2916_v12 }
 0x4cb   : >> { %1784 = vperm.xlu1 %2647, %v3489_v16   ;;  %v2655_v16 = vpop.eup %2654 }
 0x4cc   : >> { %v2657_v62 = vpop.eup %2656 }
 0x4cd   : >> { %v2659_v34 = vpop.eup %2658 }
 0x4ce   : >> { %v2661_v58 = vpop.eup %2660 }
 0x4cf   : >> { %2648 = vset.pattern.permute.xlu1 %v2919_v32 }
 0x4d0   : >> { %1815 = vperm.xlu1 %2648, %v3483_v30   ;;  %v3590_v30 = vld [vmem:[%s3838_s8 + $0x8] sm:$0xff] }
 0x4d1   : >> { %v1500_v33 = vmul.f32 %v3515_v40, %v3590_v30  ;;  %v3616_v40 = vrot.slane %v3554_v7, %v1693_v24  ;;  %v1502_v1 = vmul.f32 %v3527_v48, %v3590_v30  ;;  %v1504_v48 = vmul.f32 %v3531_v63, %v3590_v30 }
 0x4d2   : >> { %v1506_v63 = vmul.f32 %v3537_v21, %v3590_v30  ;;  %v1508_v35 = vmul.f32 %v3543_v6, %v3590_v30  ;;  %v1510_v42 = vmul.f32 %v3557_v9, %v3590_v30  ;;  %v1514_v9 = vmul.f32 %v3593_v19, %v3590_v30 }
 0x4d3   : >> { %v1517_v46 = vmul.f32 1.442695, %v1500_v33  ;;  %v1521_v8 = vmul.f32 1.442695, %v1502_v1 }
 0x4d4   : >> { %v1529_v33 = vmul.f32 1.442695, %v1506_v63 }
 0x4d5   : >> { %2664 = vpow2.f32 %v1517_v46 }
 0x4d6   : >> { %2666 = vpow2.f32 %v1543_v50  ;;  %v1533_v50 = vmul.f32 1.442695, %v1508_v35 }
 0x4d7   : >> { %v1592_v47 = vpop.permute.xlu1 %1591  ;;  %v1554_v18 = vpop.permute.xlu0 %1553  ;;  %2668 = vpow2.f32 %v1521_v8 }
 0x4d8   : >> { %v1598_v28 = vmul.f32 %v1592_v47, %v3564_v25  ;;  %v1561_v3 = vmul.f32 %v1554_v18, %v3568_v39  ;;  %v1798_v47 = vsub.s32 7, %v3282_v51  ;;  %v2663_v18 = vpop.eup %2662  ;;  %v2684_v51 = vld [vmem:[#allocation13 + $0x10] sm:$0xff] (%p1359_p13)  }
 0x4da   : >> { %v3583_v26 = vadd.f32 %v1563_v15, %v1561_v3 }
 0x4dc   : >> { %v1600_v12 = vmul.f32 %v2653_v11, %v3583_v26  ;;  %v1627_v57 = vpop.permute.xlu1 %1626 }
 0x4dd   : >> { %v1633_v31 = vmul.f32 %v1627_v57, %v3581_v23 }
 0x4de   : >> { %v3597_v32 = vadd.f32 %v1600_v12, %v1598_v28  ;;  %v1525_v28 = vmul.f32 1.442695, %v1504_v48  ;;  %v1799_v12 = vrot.slane %v3554_v7, %v1798_v47 }
 0x4df   : >> { %v3610_v38 = vpop.permute.xlu0 %1605  ;;  %v2665_v57 = vpop.eup %2664 }
 0x4e0   : >> { %v1635_v37 = vmul.f32 %v2655_v16, %v3597_v32  ;;  %2670 = vpow2.f32 %v1525_v28  ;;  %v1564_v21 = vmul.f32 %v2896_v53, %v2665_v57  ;;  %v1537_v53 = vmul.f32 1.442695, %v1510_v42 }
 0x4e1   : >> { %v1662_v43 = vpop.permute.xlu1 %1661  ;;  %2672 = vpow2.f32 %v1529_v33 }
 0x4e2   : >> { %v3612_v56 = vadd.f32 %v1635_v37, %v1633_v31  ;;  %v1668_v45 = vmul.f32 %v1662_v43, %v3602_v0  ;;  %v2667_v31 = vpop.eup %2666  ;;  %2674 = vpow2.f32 %v1533_v50 }
 0x4e3   : >> { %2676 = vpow2.f32 %v1537_v53 }
 0x4e4   : >> { %v1670_v60 = vmul.f32 %v2657_v62, %v3612_v56  ;;  %v3619_v61 = vpop.permute.xlu0 %1780 }
 0x4e6   : >> { %v3624_v2 = vadd.f32 %v1670_v60, %v1668_v45  ;;  %v1697_v4 = vpop.permute.xlu1 %1696  ;;  %v2669_v45 = vpop.eup %2668 }
 0x4e7   : >> { %v1703_v41 = vmul.f32 %v1697_v4, %v3616_v40 }
 0x4e8   : >> { %v1705_v5 = vmul.f32 %v2659_v34, %v3624_v2 }
 0x4e9   : >> { %v3631_v10 = vpop.permute.xlu0 %1644 }
 0x4ea   : >> { %v3636_v14 = vadd.f32 %v1705_v5, %v1703_v41  ;;  %v2671_v4 = vpop.eup %2670 }
 0x4eb   : >> { %v1732_v15 = vpop.permute.xlu1 %1731  ;;  %v2673_v13 = vpop.eup %2672 }
 0x4ec   : >> { %v1738_v44 = vmul.f32 %v1732_v15, %v3629_v36  ;;  %v1740_v49 = vmul.f32 %v2661_v58, %v3636_v14  ;;  %v2675_v47 = vpop.eup %2674 }
 0x4ee   : >> { %v3644_v3 = vadd.f32 %v1740_v49, %v1738_v44  ;;  %v3646_v11 = vpop.permute.xlu0 %1714 }
 0x4f0   : >> { %v1767_v27 = vpop.permute.xlu1 %1766  ;;  %v1775_v29 = vmul.f32 %v2663_v18, %v3644_v3  ;;  %v1545_v18 = vmul.f32 1.442695, %v1514_v9 }
 0x4f1   : >> { %v1773_v16 = vmul.f32 %v1767_v27, %v3642_v22 }
 0x4f3   : >> { %v3653_v20 = vadd.f32 %v1775_v29, %v1773_v16  ;;  %v1802_v24 = vpop.permute.xlu0 %1801 }
 0x4f4   : >> { %v1808_v37 = vmul.f32 %v1802_v24, %v1799_v12 }
 0x4f5   : >> { %v1559_v62 = vpop.permute.xlu1 %1558  ;;  %v1810_v43 = vmul.f32 %v2667_v31, %v3653_v20 }
 0x4f6   : >> { %v1562_v7 = vmul.f32 %v1559_v62, %v3568_v39  ;;  %v1512_v39 = vmul.f32 %v3572_v17, %v3590_v30 }
 0x4f7   : >> { %v3660_v46 = vadd.f32 %v1810_v43, %v1808_v37  }
 0x4f8   : >> { %v1566_v60 = vadd.f32 %v1564_v21, %v1562_v7  ;;  %v1541_v48 = vmul.f32 1.442695, %v1512_v39 }
 0x4fa   : >> { %v1596_v34 = vpop.permute.xlu1 %1595  ;;  %v1601_v1 = vmul.f32 %v2669_v45, %v1566_v60  ;;  %2678 = vpow2.f32 %v1541_v48 }
 0x4fb   : >> { %v1599_v6 = vmul.f32 %v1596_v34, %v3564_v25  ;;  %2680 = vpow2.f32 %v1545_v18 }
 0x4fd   : >> { %v1603_v41 = vadd.f32 %v1601_v1, %v1599_v6 }
 0x4ff   : >> { %v1631_v5 = vpop.permute.xlu1 %1630  ;;  %v1636_v58 = vmul.f32 %v2671_v4, %v1603_v41 }
 0x500   : >> { %v1634_v8 = vmul.f32 %v1631_v5, %v3581_v23  ;;  %v2677_v23 = vpop.eup %2676 }
 0x502   : >> { %v1638_v15 = vadd.f32 %v1636_v58, %v1634_v8 }
 0x504   : >> { %v1666_v44 = vpop.permute.xlu1 %1665  ;;  %v1671_v25 = vmul.f32 %v2673_v13, %v1638_v15  ;;  %v2679_v30 = vpop.eup %2678 }
 0x505   : >> { %v1669_v49 = vmul.f32 %v1666_v44, %v3602_v0  ;;  %v2681_v35 = vpop.eup %2680 }
 0x507   : >> { %v1673_v28 = vadd.f32 %v1671_v25, %v1669_v49 }
 0x509   : >> { %v1701_v17 = vpop.permute.xlu1 %1700  ;;  %v1706_v63 = vmul.f32 %v2675_v47, %v1673_v28 }
 0x50a   : >> { %v1704_v27 = vmul.f32 %v1701_v17, %v3616_v40 }
 0x50c   : >> { %v1708_v29 = vadd.f32 %v1706_v63, %v1704_v27 }
 0x50e   : >> { %v1736_v57 = vpop.permute.xlu1 %1735  ;;  %v1741_v16 = vmul.f32 %v2677_v23, %v1708_v29  ;;  %v1718_v1 = vmul.f32 %v3646_v11, %v1708_v29 }
 0x50f   : >> { %v1739_v31 = vmul.f32 %v1736_v57, %v3629_v36  ;;  %v1648_v36 = vmul.f32 %v3631_v10, %v1638_v15  ;;  %v1612_v10 = vmul.f32 %v3610_v38, %v3597_v32 }
 0x511   : >> { %v1743_v19 = vadd.f32 %v1741_v16, %v1739_v31 }
 0x513   : >> { %v1771_v33 = vpop.permute.xlu1 %1770  ;;  %v1776_v24 = vmul.f32 %v2679_v30, %v1743_v19 }
 0x514   : >> { %v1774_v0 = vmul.f32 %v1771_v33, %v3642_v22 }
 0x516   : >> { %v3674_v37 = vadd.f32 %v1776_v24, %v1774_v0 }
 0x518   : >> { %v1806_v21 = vpop.permute.xlu1 %1805  ;;  %v1811_v62 = vmul.f32 %v2681_v35, %v3674_v37 }
 0x519   : >> { %v1809_v40 = vmul.f32 %v1806_v21, %v1799_v12 }
 0x51b   : >> { %v3677_v53 = vadd.f32 %v1811_v62, %v1809_v40  }
 0x51d   : >> { %v1570_v43 = vpop.permute.xlu1 %1569 }
 0x51e   : >> { %v1577_v12 = vmul.f32 %v1570_v43, %v3583_v26 }
 0x522   : >> { %v1641_v7 = vpop.permute.xlu1 %1640 }
 0x523   : >> { %v1647_v45 = vmul.f32 %v1641_v7, %v3612_v56 }
 0x525   : >> { %v1649_v50 = vadd.f32 %v1648_v36, %v1647_v45 }
 0x527   : >> { %v1676_v42 = vpop.permute.xlu1 %1675  ;;  %v1650_v5 = vrot.slane %v1649_v50, 4 }
 0x528   : >> { %v1682_v26 = vmul.f32 %v1676_v42, %v3624_v2 }
 0x529   : >> { %v1651_v13 = vadd.f32 %v1650_v5, %v1649_v50 }
 0x52b   : >> { %v1652_v25 = vrot.slane %v1651_v13, 2 }
 0x52c   : >> { %v1711_v34 = vpop.permute.xlu1 %1710 }
 0x52d   : >> { %v1717_v22 = vmul.f32 %v1711_v34, %v3636_v14  ;;  %v1653_v27 = vadd.f32 %v1652_v25, %v1651_v13  ;;  %v1820_v34 = vpop.permute.xlu0 %1819 }
 0x52f   : >> { %v1719_v6 = vadd.f32 %v1718_v1, %v1717_v22  ;;  %v1654_v33 = vrot.slane %v1653_v27, 1 }
 0x531   : >> { %v1746_v4 = vpop.permute.xlu1 %1745  ;;  %v1720_v15 = vrot.slane %v1719_v6, 4  ;;  %v1655_v7 = vadd.f32 %v1654_v33, %v1653_v27 }
 0x532   : >> { %v1752_v38 = vmul.f32 %v1746_v4, %v3644_v3  ;;  %v1787_v3 = vmul.f32 %v3619_v61, %v3653_v20 }
 0x533   : >> { %v1721_v49 = vadd.f32 %v1720_v15, %v1719_v6 }
 0x535   : >> { %v1722_v29 = vrot.slane %v1721_v49, 2 }
 0x536   : >> { %v1575_v39 = vpop.permute.xlu1 %1574 }
 0x537   : >> { %v1578_v58 = vmul.f32 %v1575_v39, %v1566_v60  ;;  %v1723_v0 = vadd.f32 %v1722_v29, %v1721_v49  ;;  %v2682_v29 = vld [vmem:[#allocation13] sm:$0xff] (%p1359_p13)  }
 0x539   : >> { %v1579_v8 = vadd.f32 %v1578_v58, %v1577_v12  ;;  %v1823_v58 = vmul.f32 %v1820_v34, %v3677_v53  ;;  %v2276_v53 = vmul.f32 (%p1359_p13), -1.442695, %v2326_v55 }
 0x53b   : >> { %v1580_v48 = vrot.slane %v1579_v8, 4  ;;  %v1610_v56 = vpop.permute.xlu1 %1609  ;;  %2690 = vpow2.f32 (%p1359_p13), %v2276_v53 }
 0x53c   : >> { %v1613_v9 = vmul.f32 %v1610_v56, %v1603_v41 }
 0x53d   : >> { %v1581_v44 = vadd.f32 %v1580_v48, %v1579_v8 }
 0x53e   : >> { %v1614_v14 = vadd.f32 %v1613_v9, %v1612_v10 }
 0x53f   : >> { %v1582_v11 = vrot.slane %v1581_v44, 2 }
 0x540   : >> { %v1615_v47 = vrot.slane %v1614_v14, 4  ;;  %v1680_v18 = vpop.permute.xlu1 %1679 }
 0x541   : >> { %v1683_v17 = vmul.f32 %v1680_v18, %v1673_v28  ;;  %v1583_v60 = vadd.f32 %v1582_v11, %v1581_v44 }
 0x542   : >> { %v1616_v63 = vadd.f32 %v1615_v47, %v1614_v14 }
 0x543   : >> { %v1684_v23 = vadd.f32 %v1683_v17, %v1682_v26  ;;  %v1584_v41 = vrot.slane %v1583_v60, 1 }
 0x544   : >> { %v1617_v57 = vrot.slane %v1616_v63, 2 }
 0x545   : >> { %v1685_v16 = vrot.slane %v1684_v23, 4  ;;  %v1750_v32 = vpop.permute.xlu1 %1749  ;;  %v1585_v28 = vadd.f32 %v1584_v41, %v1583_v60  ;;  %v3731_v41 = vld [vmem:[#allocation5 + $0x10] sm:$0xf] (%p1359_p13) }
 0x546   : >> { %v1618_v31 = vadd.f32 %v1617_v57, %v1616_v63  ;;  %v1753_v30 = vmul.f32 %v1750_v32, %v1743_v19  ;;  %v1724_v19 = vrot.slane %v1723_v0, 1  ;;  %v2683_v57 = vld [vmem:[#allocation13 + $0x8] sm:$0xff] (%p1359_p13)  }
 0x547   : >> { %v1686_v24 = vadd.f32 %v1685_v16, %v1684_v23  ;;  %v3869_v23 = vmov %v3660_v46  ;;  %v2277_v16 = vmul.f32 (%p1359_p13), -1.442695, %v2327_v59 }
 0x548   : >> { %v1619_v35 = vrot.slane %v1618_v31, 1  ;;  %v1754_v21 = vadd.f32 %v1753_v30, %v1752_v38  ;;  %v1725_v8 = vadd.f32 %v1724_v19, %v1723_v0  ;;  %v2921_v23 = vmov (%p1359_p13), 0.0  }
 0x549   : >> { %v1687_v2 = vrot.slane %v1686_v24, 2  ;;  %2370 = vmatprep.subr.bf16.mxu1 (%p1359_p13), %v2921_v23  ;;  %2342 = vmatprep.subr.bf16.mxu0 (%p1359_p13), %v2921_v23  ;;  %2692 = vpow2.f32 (%p1359_p13), %v2277_v16 }
 0x54a   : >> { %v1620_v62 = vadd.f32 %v1619_v35, %v1618_v31  ;;  %v1755_v40 = vrot.slane %v1754_v21, 4  ;;  %v1785_v43 = vpop.permute.xlu1 %1784  ;;  %2362 = vmatprep.mubr.msk.bf16.mxu1 (%p1359_p13), %vm2922_vm10, %v2921_v23  ;;  %2358 = vmatprep.mubr.msk.bf16.mxu0 (%p1359_p13), %vm2922_vm10, %v2921_v23  ;;  %v2686_v31 = vld [vmem:[#allocation13 + $0x20] sm:$0xff] (%p1359_p13)   ;;  %v2687_v35 = vld [vmem:[#allocation13 + $0x28] sm:$0xff] (%p1359_p13)  }
 0x54b   : >> { %v1688_v45 = vadd.f32 %v1687_v2, %v1686_v24  ;;  %v1788_v36 = vmul.f32 %v1785_v43, %v3674_v37  ;;  %2378 = vmatpush3.bf16.msra.mxu1 (%p1359_p13), %v2682_v29  ;;  %2343 = vmatpush3.bf16.msra.mxu0 (%p1359_p13), %v2682_v29  ;;  %v1885_v24 = vunpack.c.l.bf16 (%p1359_p13), %v3731_v41  ;;  %v2691_v2 = vpop.eup (%p1359_p13), %2690 }
 0x54c   : >> { %v1832_v50 = vsel %vm1831_vm7, %v1585_v28, %v1620_v62  ;;  %v1756_v42 = vadd.f32 %v1755_v40, %v1754_v21  ;;  %2371 = vmatprep.subr.bf16.mxu1 (%p1359_p13), %v2921_v23  ;;  %2344 = vmatprep.subr.bf16.mxu0 (%p1359_p13), %v2921_v23  ;;  %v2688_v21 = vld [vmem:[#allocation13 + $0x30] sm:$0xff] (%p1359_p13)   ;;  %v2329_v62 = vld [vmem:[#allocation4 + $0x8] sm:$0xff] (%p1359_p13)   ;;  %v1903_v40 = vadd.f32 (%p1359_p13), 1.0, %v2691_v2 }
 0x54d   : >> { %v1689_v22 = vrot.slane %v1688_v45, 1  ;;  %v1834_v1 = vsel %vm1833_vm8, %v1832_v50, %v1655_v7  ;;  %v1789_v6 = vadd.f32 %v1788_v36, %v1787_v3  ;;  %v2278_v0 = vmul.f32 (%p1359_p13), -1.442695, %v1885_v24  ;;  %v2689_v7 = vld [vmem:[#allocation13 + $0x38] sm:$0xff] (%p1359_p13)  }
 0x54e   : >> { %v1757_v4 = vrot.slane %v1756_v42, 2  ;;  %v2313_v36 = vld [vmem:[#allocation4] sm:$0xff] (%p1359_p13)   ;;  %v2318_v50 = vunpack.c.l.bf16 (%p1359_p13), %v2329_v62 }
 0x54f   : >> { %v1690_v39 = vadd.f32 %v1689_v22, %v1688_v45  ;;  %v1790_v12 = vrot.slane %v1789_v6, 4  ;;  %v1816_v5 = vpop.permute.xlu1 %1815  ;;  %2379 = vmatpush3.bf16.msra.mxu1 (%p1359_p13), %v2683_v57  ;;  %2345 = vmatpush3.bf16.msra.mxu0 (%p1359_p13), %v2683_v57  ;;  %v2319_v22 = vunpack.c.h.bf16 (%p1359_p13), %v2329_v62 }
 0x550   : >> { %v1758_v13 = vadd.f32 %v1757_v4, %v1756_v42  ;;  %v1822_v61 = vmul.f32 %v1816_v5, %v3660_v46  ;;  %2372 = vmatprep.subr.bf16.mxu1 (%p1359_p13), %v2921_v23  ;;  %2346 = vmatprep.subr.bf16.mxu0 (%p1359_p13), %v2921_v23  ;;  %v3721_v46 = vld [vmem:[#allocation5] sm:$0xff] (%p1359_p13)   ;;  %v1853_v4 = vld [vmem:[#allocation4 + $0x10] sm:$0xf] (%p1359_p13) }
 0x551   : >> { %v1835_v20 = vsel %vm1317_vm3, %v1834_v1, %v1690_v39  ;;  %v1791_v37 = vadd.f32 %v1790_v12, %v1789_v6  ;;  %v2322_v32 = vunpack.c.l.bf16 (%p1359_p13), %v3721_v46  ;;  %v2323_v38 = vunpack.c.h.bf16 (%p1359_p13), %v3721_v46  ;;  %v2273_v1 = vld [vmem:[%s3839_s9] ss:$0 sm:$0xff] (%p1359_p13) }
 0x552   : >> { %v1759_v48 = vrot.slane %v1758_v13, 1  ;;  %v1837_v56 = vsel %vm1836_vm9, %v1835_v20, %v1725_v8  ;;  %v1824_v10 = vadd.f32 %v1823_v58, %v1822_v61  ;;  %v2314_v6 = vunpack.c.l.bf16 (%p1359_p13), %v2313_v36 }
 0x553   : >> { %v1792_v15 = vrot.slane %v1791_v37, 2  ;;  %2380 = vmatpush3.bf16.msra.mxu1 (%p1359_p13), %v2684_v51  ;;  %2347 = vmatpush3.bf16.msra.mxu0 (%p1359_p13), %v2684_v51  ;;  %v2274_v30 = vmul.f32 (%p1359_p13), -1.442695, %v2322_v32  ;;  %v2275_v33 = vmul.f32 (%p1359_p13), -1.442695, %v2323_v38  ;;  %v2693_v28 = vpop.eup (%p1359_p13), %2692  ;;  %v2315_v12 = vunpack.c.h.bf16 (%p1359_p13), %v2313_v36 }
 0x554   : >> { %v1760_v9 = vadd.f32 %v1759_v48, %v1758_v13  ;;  %v1825_v44 = vrot.slane %v1824_v10, 4  ;;  %2373 = vmatprep.subr.bf16.mxu1 (%p1359_p13), %v2921_v23  ;;  %2348 = vmatprep.subr.bf16.mxu0 (%p1359_p13), %v2921_v23  ;;  %v1904_v45 = vadd.f32 (%p1359_p13), 1.0, %v2693_v28  ;;  %v1868_v5 = vmul.f32 (%p1359_p13), %v2318_v50, %v2273_v1 }
 0x555   : >> { %v1793_v14 = vadd.f32 %v1792_v15, %v1791_v37  ;;  %2694 = vpow2.f32 (%p1359_p13), %v2274_v30  ;;  %v1869_v8 = vmul.f32 (%p1359_p13), %v2319_v22, %v2273_v1  ;;  %v1858_v13 = vunpack.c.l.bf16 (%p1359_p13), %v1853_v4  ;;  %v2049_v30 = vld [vmem:[%s3139_s19] sm:$0xff] (%p1359_p13) }
 0x556   : >> { %v1838_v25 = vsel %vm868_vm2, %v1837_v56, %v1760_v9  ;;  %v1826_v11 = vadd.f32 %v1825_v44, %v1824_v10  ;;  %2696 = vpow2.f32 (%p1359_p13), %v2275_v33  ;;  %v1866_v20 = vmul.f32 (%p1359_p13), %v2314_v6, %v2273_v1 }
 0x557   : >> { %v1794_v49 = vrot.slane %v1793_v14, 1  ;;  %2381 = vmatpush3.bf16.msra.mxu1 (%p1359_p13), %v2685_v54  ;;  %2349 = vmatpush3.bf16.msra.mxu0 (%p1359_p13), %v2685_v54  ;;  %2698 = vpow2.f32 (%p1359_p13), %v2278_v0  ;;  %v1867_v48 = vmul.f32 (%p1359_p13), %v2315_v12, %v2273_v1  ;;  %v1870_v44 = vmul.f32 (%p1359_p13), %v2273_v1, %v1858_v13 }
 0x558   : >> { %v1827_v47 = vrot.slane %v1826_v11, 2  ;;  %2374 = vmatprep.subr.bf16.mxu1 (%p1359_p13), %v2921_v23  ;;  %2350 = vmatprep.subr.bf16.mxu0 (%p1359_p13), %v2921_v23  ;;  %2700 = vrcp.f32 (%p1359_p13), %v1903_v40 }
 0x559   : >> { %v1795_v18 = vadd.f32 %v1794_v49, %v1793_v14  ;;  %2702 = vrcp.f32 (%p1359_p13), %v1904_v45 }
 0x55a   : >> { %v1828_v26 = vadd.f32 %v1827_v47, %v1826_v11 }
 0x55b   : >> { %v1839_v17 = vsel %vm830_vm1, %v1838_v25, %v1795_v18  ;;  %1361 = sbr.rel (!%p1359_p13) target bundleno = 978 (0x3d2), region = 125  ;;  %2382 = vmatpush3.bf16.msra.mxu1 (%p1359_p13), %v2686_v31  ;;  %2351 = vmatpush3.bf16.msra.mxu0 (%p1359_p13), %v2686_v31  ;;  %v2052_v31 = vld [vmem:[%s3139_s19 + $0x18] sm:$0xff] (%p1359_p13) }
 0x55c   : >> { %v1829_v60 = vrot.slane %v1828_v26, 1  ;;  %2375 = vmatprep.subr.bf16.mxu1 (%p1359_p13), %v2921_v23  ;;  %2352 = vmatprep.subr.bf16.mxu0 (%p1359_p13), %v2921_v23 }
 0x55e   : >> { %v1830_v63 = vadd.f32 %v1829_v60, %v1828_v26 }
 0x55f   : > { %2383 = vmatpush3.bf16.msra.mxu1 (%p1359_p13), %v2687_v35  ;;  %2353 = vmatpush3.bf16.msra.mxu0 (%p1359_p13), %v2687_v35  ;;  %v2695_v43 = vpop.eup (%p1359_p13), %2694  ;;  %v2050_v35 = vld [vmem:[%s3139_s19 + $0x8] sm:$0xff] (%p1359_p13) }
 0x560   : >> { %v1840_v27 = vsel %vm790_vm0, %v1839_v17, %v1830_v63  ;;  %2376 = vmatprep.subr.bf16.mxu1 (%p1359_p13), %v2921_v23  ;;  %2354 = vmatprep.subr.bf16.mxu0 (%p1359_p13), %v2921_v23  ;;  %v2697_v3 = vpop.eup (%p1359_p13), %2696  ;;  %v1901_v19 = vadd.f32 (%p1359_p13), 1.0, %v2695_v43 }
 0x561   : >> { %1841 = vst [vmem:[%s3551_s28] sm:$0xff] %v1840_v27  ;;  %v1902_v42 = vadd.f32 (%p1359_p13), 1.0, %v2697_v3  ;;  %v2699_v34 = vpop.eup (%p1359_p13), %2698 }
 0x562   : > { %2704 = vrcp.f32 %v1901_v19  ;;  %v1905_v39 = vadd.f32 1.0, %v2699_v34  ;;  %v2701_v15 = vpop.eup %2700 }
 0x563   : > { %2384 = vmatpush3.bf16.msra.mxu1 %v2688_v21  ;;  %2355 = vmatpush3.bf16.msra.mxu0 %v2688_v21  ;;  %2706 = vrcp.f32 %v1902_v42  ;;  %v2703_v14 = vpop.eup %2702  ;;  %v1918_v25 = vmul.f32 %v2701_v15, %v2326_v55 }
 0x564   : > { %2377 = vmatprep.subr.bf16.mxu1 %v2921_v23  ;;  %2356 = vmatprep.subr.bf16.mxu0 %v2921_v23  ;;  %2708 = vrcp.f32 %v1905_v39  ;;  %v1919_v18 = vmul.f32 %v2703_v14, %v2327_v59 }
 0x567   : > { %2385 = vmatpush3.bf16.msra.mxu1 %v2689_v7  ;;  %2357 = vmatpush3.bf16.msra.mxu0 %v2689_v7  ;;  %v2053_v7 = vld [vmem:[%s3139_s19 + $0x20] sm:$0xff] }
 0x568   : > { %v1846_v58 = vld [vmem:[#allocation2 + $0x10] sm:$0xff]  ;;  %v1847_v61 = vld [vmem:[#allocation2 + $0x18] sm:$0xff]  ;;  %v1844_v37 = vld [vmem:[#allocation2] sm:$0xff] }
 0x569   : > { %v1873_v56 = vadd.f32 %v1868_v5, %v1846_v58  ;;  %v1845_v10 = vld [vmem:[#allocation2 + $0x8] sm:$0xff]  ;;  %v1874_v9 = vadd.f32 %v1869_v8, %v1847_v61  ;;  %v1871_v11 = vadd.f32 %v1866_v20, %v1844_v37  ;;  %v1848_v49 = vld [vmem:[#allocation2 + $0x20] sm:$0xff] }
 0x56a   : > { %v1872_v26 = vadd.f32 %v1867_v48, %v1845_v10  ;;  %v1875_v57 = vadd.f32 %v1870_v44, %v1848_v49 }
 0x56b   : > { %v1923_v60 = vmul.f32 %v1918_v25, %v1873_v56  ;;  %v1924_v27 = vmul.f32 %v1919_v18, %v1874_v9 }
 0x56c   : > { %v2705_v47 = vpop.eup %2704 }
 0x56d   : > { %v2707_v17 = vpop.eup %2706  ;;  %v1916_v63 = vmul.f32 %v2705_v47, %v2322_v32  ;;  %v1927_v55 = vpack.c.bf16 %v1924_v27, %v1923_v60  ;;  %v2051_v32 = vld [vmem:[%s3139_s19 + $0x10] sm:$0xff]  ;;  %s2794_s19 = scalar_lea.vmem %s3779_s29, 640 }
 0x56e   : > { %v1917_v29 = vmul.f32 %v2707_v17, %v2323_v38  ;;  %v2709_v51 = vpop.eup %2708  ;;  %p2795_p4 = scmp.ne.s32.totalorder %s3779_s29, %s2794_s19  ;;  %p2802_p5 = scmp.lt.s32.totalorder %s2800_s14, %s2794_s19 }
 0x56f   : > { %v1921_v54 = vmul.f32 %v1916_v63, %v1871_v11  ;;  %v1920_v52 = vmul.f32 %v2709_v51, %v1885_v24  ;;  %2363 = vmatmul.mubr.bf16.vlgmr.msra.gmra.mrb[12].mxu1 %v1927_v55 }
 0x570   : > { %v1922_v53 = vmul.f32 %v1917_v29, %v1872_v26  ;;  %2366 = vmatprep.mubr.msk.bf16.mxu1 %vm2922_vm10, %v2921_v23  ;;  %p2796_p10 = pnand %p2795_p4, %p3870_p8  ;;  %p2803_p6 = por %p2802_p5, %p2801_p3 }
 0x571   : > { %v1925_v16 = vmul.f32 %v1920_v52, %v1875_v57 }
 0x572   : > { %v1926_v59 = vpack.c.bf16 %v1922_v53, %v1921_v54  ;;  %p2797_p11 = pneg %p2796_p10 }
 0x573   : > { %v1928_v46 = vpack.c.bf16 %v1925_v16, %v1925_v16 }
 0x574   : > { %2359 = vmatmul.mubr.bf16.vlgmr.msra.gmra.mrb[12].mxu0 %v1926_v59  ;;  %p2804_p7 = pnand %p2803_p6, %p2797_p11 }
 0x577   : > { %2367 = vmatmul.mubr.bf16.gmra.mrb[16].mxu1 %v1928_v46 }
 0x642   : > { %v2035_v38 = vpop.f32.mrb[12].mxu1 }
 0x643   : > { %v2056_v41 = vadd.f32 %v2051_v32, %v2035_v38  ;;  %v2364_v33 = vpop.f32.mrb[13].mxu1 }
 0x644   : > { %v2038_v24 = vpop.f32.mrb[14].mxu1 }
 0x645   : > { %2061 = vst [vmem:[%s3457_s17 + $0x10] sm:$0xff] %v2056_v41  ;;  %v2057_v23 = vadd.f32 %v2052_v31, %v2038_v24  ;;  %v2365_v2 = vpop.f32.mrb[15].mxu1 }
 0x647   : > { %v2027_v0 = vpop.f32.mrb[12].mxu0  ;;  %2062 = vst [vmem:[%s3457_s17 + $0x18] sm:$0xff] %v2057_v23 }
 0x648   : > { %v2054_v21 = vadd.f32 %v2049_v30, %v2027_v0  ;;  %v2360_v28 = vpop.f32.mrb[13].mxu0 }
 0x649   : > { %v2030_v62 = vpop.f32.mrb[14].mxu0 }
 0x64a   : > { %2059 = vst [vmem:[%s3457_s17] sm:$0xff] %v2054_v21  ;;  %v2055_v40 = vadd.f32 %v2050_v35, %v2030_v62  ;;  %v2361_v43 = vpop.f32.mrb[15].mxu0  ;;  %v2043_v45 = vpop.f32.mrb[16].mxu1 }
 0x64b   : > { %v2058_v3 = vadd.f32 %v2053_v7, %v2043_v45  ;;  %v2368_v36 = vpop.f32.mrb[17].mxu1 }
 0x64c   : > { %2060 = vst [vmem:[%s3457_s17 + $0x8] sm:$0xff] %v2055_v40  ;;  %v2046_v19 = vpop.f32.mrb[18].mxu1 }
 0x64d   : > { %2063 = vst [vmem:[%s3457_s17 + $0x20] sm:$0xff] %v2058_v3  ;;  %v2369_v50 = vpop.f32.mrb[19].mxu1 }
 0x64e   : > { %2807 = shalt.err (!%p2804_p7)
}
 0x64f   : > { %s2808_s13 = scalar_lea.hbm %s3777_s5, 640  ;;  %s2812_s25 = scalar_lea.hbm %s3841_s11, 1280 }
 0x650   : > { %p2809_p9 = scmp.ne.s32.totalorder %s3777_s5, %s2808_s13  ;;  %p2813_p2 = scmp.lt.u32.totalorder %s3777_s5, %s3841_s11 }
 0x651   : > { %p2814_p1 = scmp.lt.u32.totalorder %s2812_s25, %s2808_s13  ;;  %p2816_p4 = scmp.lt.u32.totalorder %s2808_s13, %s3777_s5 }
 0x652   : > { %p2810_p12 = pnand %p2809_p9, %p3870_p8 }
 0x653   : > { %p2815_p13 = por %p2814_p1, %p2813_p2 }
 0x654   : > { %p2811_p0 = pneg %p2810_p12 }
 0x655   : > { %p2817_p10 = por %p2816_p4, %p2815_p13 }
 0x657   : > { %p2818_p11 = pnand %p2817_p10, %p2811_p0 }
 0x659   : > { %2821 = shalt.err (!%p2818_p11)
}
 0x65a   : > { %s2924_s21 = smov 128   ;;  %s2925_s26 = smov 8  }
 0x65b   : > { %2401 = dma.vmem_to_hbm [thread:$0]  (%p3870_p8), %s3779_s29, 640, %s3777_s5, %s3784_s20, %s2924_s21, %s2924_s21, %s2925_s26  }
 0x65c PF: > { %s3871_s15 = sld [smem:[#allocation18_spill]]  ;;  %s3872_s30 = sld [smem:[#allocation22_spill]] }
 0x65d   : > { %p2423_p3 = scmp.ge.s32.totalorder %s2892_s22, 2 }
 0x662   : > { %s2095_s19 = sand.u32 1, %s3871_s15   ;;  %p3873_p5 = scmp.ne.s32.totalorder %s3872_s30, 0 }
 0x663   : > { %s2096_s16 = scalar_lea.sflag [#allocation10], %s2095_s19 }
 0x664   : > { %p2414_p6 = pnand %p2423_p3, %p3873_p5 }
 0x666   : > { %2867 = dma.done.wait (!%p2414_p6), %s2096_s16, 640  }
 0x667   : > { %2869 = vsyncadd (!%p2414_p6), %s2096_s16, 4294966656  ;;  %s26_s22 = sadd.s32 1, %s2892_s22   ;;  %s3874_s12 = sld [smem:[#allocation19_spill]] }
 0x668   : > { %p23_p7 = scmp.ge.s32.totalorder %s26_s22, 4   ;;  %s3875_s19 = sld [smem:[#allocation23_spill]] }
 0x669   : > { %s3876_s20 = sld [smem:[#allocation20_spill]]  ;;  %s3877_s21 = sld [smem:[#allocation21_spill]] }
 0x66a   : > { %s3878_s17 = smov %s2876_s18  ;;  %25 = sbr.rel (!%p23_p7) target bundleno = 8 (0x8), region = 136 }
 0x66d   : > { %s3879_s18 = smov %s3874_s12 }
 0x671   :  { %2101 = vsyncpa [#allocation9], 1 }
 0x672   :  { %2103 = vsyncpa [#allocation9 + $0x1], 1 }
 0x673   :  { %2104 = vsyncpa [#allocation12], 1 }
 0x674   :  { %2105 = vsyncpa [#allocation10], 1 }
 0x675   :  { %2107 = vsyncpa [#allocation10 + $0x1], 1 }

</bundles_post_ra>
